<compile_context>
chip_gen: v5e
topology: v5e:2x2
jax: 0.10.0
libtpu: 0.0.40
codegen_flags: <defaults>
</compile_context>

<pallas_src>
import jax
import jax.numpy as jnp
import numpy as np
from jax.experimental import pallas as pl
from jax.experimental.pallas import tpu as pltpu

ALPHA = 32.0          # self.alpha
EPS = 1e-12           # torch F.normalize eps
LEAKY_SLOPE = 0.2     # LeakyReLU(0.2)


def _attention_fused_kernel(x_ref, wl_ref, bl_ref, wk_ref, wq_ref,
                            out_ref, sa_ref, la_ref, pad_ref):
    # x_ref  : (S, C, H, W) VMEM   one batch element, native layout
    # wl_ref : (C,)  SMEM          loc_att 1x1 conv weight
    # bl_ref : (1,)  SMEM          loc_att conv bias
    # wk_ref : (9, S, 1, 1) VMEM   depthwise 3x3 taps, tap-major: wk_ref[t] -> (S,1,1)
    # wq_ref : (S,)  SMEM          q 1x1 conv weight
    # out_ref: (S, C, H, W) out    (1 + slice_attention[s]) * x
    # sa_ref : (S, 1, 1)    out    slice attention (softmax over S)
    # la_ref : (S, H, W)    out    local attention (post LeakyReLU)
    # pad_ref: (S, H+2, W+2) VMEM  zero-padded la used for the 3x3 conv taps
    S, C, H, W = x_ref.shape

    # --- loc_att: 1x1 conv over channels + bias + LeakyReLU(0.2), all S at once ---
    acc = jnp.zeros((S, H, W), jnp.float32)
    for ci in range(C):
        acc = acc + wl_ref[ci] * x_ref[:, ci]
    la = acc + bl_ref[0]
    la = jnp.where(la >= 0.0, la, LEAKY_SLOPE * la)
    la_ref[...] = la

    # --- q: 1x1 conv over S (no bias), then L2-normalize over H*W ---
    qv = jnp.zeros((H, W), jnp.float32)
    for si in range(S):
        qv = qv + wq_ref[si] * la[si]
    qss = jnp.sum(jnp.sum(qv * qv, axis=1, keepdims=True), axis=0, keepdims=True)
    qn = qv * (1.0 / jnp.maximum(jnp.sqrt(qss), EPS))

    # --- k: depthwise 3x3 conv (groups=S, pad=1, no bias), vectorized across S ---
    pad_ref[...] = jnp.zeros((S, H + 2, W + 2), jnp.float32)
    pad_ref[:, 1:H + 1, 1:W + 1] = la
    ks = jnp.zeros((S, H, W), jnp.float32)
    for t in range(9):
        dy, dx = t // 3, t % 3
        ks = ks + wk_ref[t] * pad_ref[:, dy:dy + H, dx:dx + W]

    # --- per-slice L2 norm of k, q·kᵀ, *alpha — kept entirely in vregs ---
    kss = jnp.sum(jnp.sum(ks * ks, axis=2, keepdims=True), axis=1, keepdims=True)     # (S,1,1)
    kinv = 1.0 / jnp.maximum(jnp.sqrt(kss), EPS)
    dots = jnp.sum(jnp.sum(qn[None] * ks, axis=2, keepdims=True),
                   axis=1, keepdims=True)                                              # (S,1,1)
    logits = dots * kinv * ALPHA

    # --- softmax over S (registers only, single writeback) ---
    m = jnp.max(logits, axis=0, keepdims=True)
    e = jnp.exp(logits - m)
    sa = e / jnp.sum(e, axis=0, keepdims=True)                                         # (S,1,1)
    sa_ref[...] = sa

    # --- fused scale: out = attn * x + x = (1 + sa[s]) * x ---
    scale = 1.0 + sa
    for ci in range(C):
        out_ref[:, ci] = x_ref[:, ci] * scale


def attention_forward(x, params):
    """x: (B, S, C, H, W) float32. Returns (out+x, slice_attention, local_attention, alpha)."""
    wl, bl, wk, wq = params
    B, S, C, H, W = x.shape
    # 72-element reshape outside the kernel: tap-major weights so the kernel can
    # multiply all S slices of a tap at once.
    wk_taps = jnp.transpose(wk).reshape(9, S, 1, 1)

    out, sa4, la = pl.pallas_call(
        _attention_fused_kernel,
        out_shape=(
            jax.ShapeDtypeStruct((B, S, C, H, W), jnp.float32),   # (1 + sa) * x
            jax.ShapeDtypeStruct((B, S, 1, 1), jnp.float32),      # slice attention
            jax.ShapeDtypeStruct((B, S, H, W), jnp.float32),      # local attention
        ),
        grid=(B,),
        in_specs=[
            pl.BlockSpec((None, S, C, H, W), lambda i: (i, 0, 0, 0, 0)),
            pl.BlockSpec(memory_space=pltpu.MemorySpace.SMEM),     # wl (C,)
            pl.BlockSpec(memory_space=pltpu.MemorySpace.SMEM),     # bl (1,)
            pl.BlockSpec((9, S, 1, 1), lambda i: (0, 0, 0, 0)),    # wk taps (VMEM, resident)
            pl.BlockSpec(memory_space=pltpu.MemorySpace.SMEM),     # wq (S,)
        ],
        out_specs=(
            pl.BlockSpec((None, S, C, H, W), lambda i: (i, 0, 0, 0, 0)),
            pl.BlockSpec((None, S, 1, 1), lambda i: (i, 0, 0, 0)),
            pl.BlockSpec((None, S, H, W), lambda i: (i, 0, 0, 0)),
        ),
        scratch_shapes=[
            pltpu.VMEM((S, H + 2, W + 2), jnp.float32),            # padded la for conv taps
        ],
        compiler_params=pltpu.CompilerParams(dimension_semantics=("parallel",)),
    )(x, wl, bl, wk_taps, wq)

    slice_attention = sa4.reshape(B, S)
    local_attention = la.reshape(B, S, 1, H, W)    # matches torch loc_att output shape
    return out, slice_attention, local_attention, ALPHA


def attention_reference(x, params):
    """Pure-JAX reference of the PyTorch forward, for verification."""
    wl, bl, wk, wq = params
    B, S, C, H, W = x.shape
    la = jnp.einsum('bschw,c->bshw', x, wl) + bl[0]
    la = jnp.where(la >= 0.0, la, LEAKY_SLOPE * la)
    lap = jnp.pad(la, ((0, 0), (0, 0), (1, 1), (1, 1)))
    wk3 = wk.reshape(S, 3, 3)
    k = jnp.zeros((B, S, H, W), jnp.float32)
    for dy in range(3):
        for dx in range(3):
            k = k + lap[:, :, dy:dy + H, dx:dx + W] * wk3[:, dy, dx][None, :, None, None]
    kf = k.reshape(B, S, H * W)
    q = jnp.einsum('bshw,s->bhw', la, wq).reshape(B, 1, H * W)
    qn = q / jnp.maximum(jnp.linalg.norm(q, axis=-1, keepdims=True), EPS)
    kn = kf / jnp.maximum(jnp.linalg.norm(kf, axis=-1, keepdims=True), EPS)
    attn = jnp.sum(qn * kn, axis=-1) * ALPHA        # (B, S)
    sa = jax.nn.softmax(attn, axis=-1)
    out = x * (1.0 + sa[:, :, None, None, None])
    return out, sa, la


if __name__ == "__main__":
    # Small synthetic config: Attention(c=S=8, in_channels=C=4), spatial 8x8, batch 2.
    B, S, C, H, W = 2, 8, 4, 8, 8
    key = jax.random.PRNGKey(0)
    k1, k2, k3, k4, k5 = jax.random.split(key, 5)

    x = jax.random.normal(k1, (B, S, C, H, W), jnp.float32)
    # Deterministic parameter init (shapes per module __init__):
    wl = jax.random.normal(k2, (C,), jnp.float32) * 0.3   # Conv2d(C, 1, 1) weight
    bl = jax.random.normal(k3, (1,), jnp.float32) * 0.1   # Conv2d(C, 1, 1) bias
    wk = jax.random.normal(k4, (S, 9), jnp.float32) * 0.3 # Conv2d(S, S, 3, groups=S) weight
    wq = jax.random.normal(k5, (S,), jnp.float32) * 0.3   # Conv2d(S, 1, 1) weight
    params = (wl, bl, wk, wq)

    out, slice_att, local_att, alpha = attention_forward(x, params)
    jax.block_until_ready(out)

    ref_out, ref_sa, ref_la = attention_reference(x, params)
    np.testing.assert_allclose(np.asarray(out), np.asarray(ref_out), rtol=1e-4, atol=1e-5)
    np.testing.assert_allclose(np.asarray(slice_att), np.asarray(ref_sa), rtol=1e-4, atol=1e-5)
    np.testing.assert_allclose(np.asarray(local_att.reshape(B, S, H, W)),
                               np.asarray(ref_la), rtol=1e-4, atol=1e-5)
    assert alpha == 32.0

    print("KERNEL_OK")
</pallas_src>

<mosaic_0001>
module attributes {stable_mosaic.version = 11 : i64} {
  func.func @_attention_fused_kernel(%arg0: i32, %arg1: memref<1x8x4x8x8xf32, #tpu.memory_space<vmem>>, %arg2: memref<4xf32, #tpu.memory_space<smem>>, %arg3: memref<1xf32, #tpu.memory_space<smem>>, %arg4: memref<9x8x1x1xf32, #tpu.memory_space<vmem>>, %arg5: memref<8xf32, #tpu.memory_space<smem>>, %arg6: memref<1x8x4x8x8xf32, #tpu.memory_space<vmem>>, %arg7: memref<1x8x1x1xf32, #tpu.memory_space<vmem>>, %arg8: memref<1x8x8x8xf32, #tpu.memory_space<vmem>>, %arg9: memref<8x10x10xf32, #tpu.memory_space<vmem>>) attributes {dimension_semantics = [#tpu.dimension_semantics<parallel>], iteration_bounds = array<i64: 2>, scalar_prefetch = 0 : i64, scratch_operands = 1 : i64, tpu.core_type = #tpu.core_type<tc>, window_params = [{transform_indices = @transform_0, window_bounds = array<i64: 1, 8, 4, 8, 8>}, {transform_indices = @transform_1, window_bounds = array<i64: 4>}, {transform_indices = @transform_2, window_bounds = array<i64: 1>}, {pipeline_mode = #tpu.pipeline_mode<synchronous>, transform_indices = @transform_3, window_bounds = array<i64: 9, 8, 1, 1>}, {transform_indices = @transform_4, window_bounds = array<i64: 8>}, {transform_indices = @transform_5, window_bounds = array<i64: 1, 8, 4, 8, 8>}, {transform_indices = @transform_6, window_bounds = array<i64: 1, 8, 1, 1>}, {transform_indices = @transform_7, window_bounds = array<i64: 1, 8, 8, 8>}]} {
    %cst = arith.constant 0.000000e+00 : f32
    %0 = vector.broadcast %cst : f32 to vector<8x8x8xf32>
    %c0 = arith.constant 0 : index
    %1 = memref.load %arg2[%c0] : memref<4xf32, #tpu.memory_space<smem>>
    %c0_0 = arith.constant 0 : index
    %c0_1 = arith.constant 0 : index
    %c0_2 = arith.constant 0 : index
    %c0_3 = arith.constant 0 : index
    %c0_4 = arith.constant 0 : index
    %2 = vector.load %arg1[%c0_0, %c0_1, %c0_2, %c0_3, %c0_4] : memref<1x8x4x8x8xf32, #tpu.memory_space<vmem>>, vector<1x8x1x8x8xf32>
    %3 = vector.shape_cast %2 : vector<1x8x1x8x8xf32> to vector<8x8x8xf32>
    %4 = vector.broadcast %1 : f32 to vector<8x8x8xf32>
    %5 = arith.mulf %4, %3 : vector<8x8x8xf32>
    %6 = arith.addf %0, %5 : vector<8x8x8xf32>
    %c1 = arith.constant 1 : index
    %7 = memref.load %arg2[%c1] : memref<4xf32, #tpu.memory_space<smem>>
    %c0_5 = arith.constant 0 : index
    %c0_6 = arith.constant 0 : index
    %c1_7 = arith.constant 1 : index
    %c0_8 = arith.constant 0 : index
    %c0_9 = arith.constant 0 : index
    %8 = vector.load %arg1[%c0_5, %c0_6, %c1_7, %c0_8, %c0_9] : memref<1x8x4x8x8xf32, #tpu.memory_space<vmem>>, vector<1x8x1x8x8xf32>
    %9 = vector.shape_cast %8 : vector<1x8x1x8x8xf32> to vector<8x8x8xf32>
    %10 = vector.broadcast %7 : f32 to vector<8x8x8xf32>
    %11 = arith.mulf %10, %9 : vector<8x8x8xf32>
    %12 = arith.addf %6, %11 : vector<8x8x8xf32>
    %c2 = arith.constant 2 : index
    %13 = memref.load %arg2[%c2] : memref<4xf32, #tpu.memory_space<smem>>
    %c0_10 = arith.constant 0 : index
    %c0_11 = arith.constant 0 : index
    %c2_12 = arith.constant 2 : index
    %c0_13 = arith.constant 0 : index
    %c0_14 = arith.constant 0 : index
    %14 = vector.load %arg1[%c0_10, %c0_11, %c2_12, %c0_13, %c0_14] : memref<1x8x4x8x8xf32, #tpu.memory_space<vmem>>, vector<1x8x1x8x8xf32>
    %15 = vector.shape_cast %14 : vector<1x8x1x8x8xf32> to vector<8x8x8xf32>
    %16 = vector.broadcast %13 : f32 to vector<8x8x8xf32>
    %17 = arith.mulf %16, %15 : vector<8x8x8xf32>
    %18 = arith.addf %12, %17 : vector<8x8x8xf32>
    %c3 = arith.constant 3 : index
    %19 = memref.load %arg2[%c3] : memref<4xf32, #tpu.memory_space<smem>>
    %c0_15 = arith.constant 0 : index
    %c0_16 = arith.constant 0 : index
    %c3_17 = arith.constant 3 : index
    %c0_18 = arith.constant 0 : index
    %c0_19 = arith.constant 0 : index
    %20 = vector.load %arg1[%c0_15, %c0_16, %c3_17, %c0_18, %c0_19] : memref<1x8x4x8x8xf32, #tpu.memory_space<vmem>>, vector<1x8x1x8x8xf32>
    %21 = vector.shape_cast %20 : vector<1x8x1x8x8xf32> to vector<8x8x8xf32>
    %22 = vector.broadcast %19 : f32 to vector<8x8x8xf32>
    %23 = arith.mulf %22, %21 : vector<8x8x8xf32>
    %24 = arith.addf %18, %23 : vector<8x8x8xf32>
    %c0_20 = arith.constant 0 : index
    %25 = memref.load %arg3[%c0_20] : memref<1xf32, #tpu.memory_space<smem>>
    %26 = vector.broadcast %25 : f32 to vector<8x8x8xf32>
    %27 = arith.addf %24, %26 : vector<8x8x8xf32>
    %cst_21 = arith.constant 0.000000e+00 : f32
    %28 = vector.broadcast %cst_21 : f32 to vector<8x8x8xf32>
    %29 = arith.cmpf oge, %27, %28 : vector<8x8x8xf32>
    %cst_22 = arith.constant 2.000000e-01 : f32
    %30 = vector.broadcast %cst_22 : f32 to vector<8x8x8xf32>
    %31 = arith.mulf %30, %27 : vector<8x8x8xf32>
    %32 = arith.select %29, %27, %31 : vector<8x8x8xi1>, vector<8x8x8xf32>
    %c0_23 = arith.constant 0 : index
    %c0_24 = arith.constant 0 : index
    %c0_25 = arith.constant 0 : index
    %c0_26 = arith.constant 0 : index
    %33 = vector.load %arg8[%c0_23, %c0_24, %c0_25, %c0_26] : memref<1x8x8x8xf32, #tpu.memory_space<vmem>>, vector<1x8x8x8xf32>
    %34 = vector.shape_cast %33 : vector<1x8x8x8xf32> to vector<8x8x8xf32>
    %35 = vector.shape_cast %32 : vector<8x8x8xf32> to vector<1x8x8x8xf32>
    tpu.vector_store %arg8[%c0_23, %c0_24, %c0_25, %c0_26], %35 {strides = array<i32>} : memref<1x8x8x8xf32, #tpu.memory_space<vmem>>, vector<1x8x8x8xf32>,
    %cst_27 = arith.constant 0.000000e+00 : f32
    %36 = vector.broadcast %cst_27 : f32 to vector<8x8xf32>
    %c0_28 = arith.constant 0 : index
    %37 = memref.load %arg5[%c0_28] : memref<8xf32, #tpu.memory_space<smem>>
    %38 = vector.extract_strided_slice %32 {offsets = [0, 0, 0], sizes = [1, 8, 8], strides = [1, 1, 1]} : vector<8x8x8xf32> to vector<1x8x8xf32>
    %39 = vector.shape_cast %38 : vector<1x8x8xf32> to vector<8x8xf32>
    %40 = vector.broadcast %37 : f32 to vector<8x8xf32>
    %41 = arith.mulf %40, %39 : vector<8x8xf32>
    %42 = arith.addf %36, %41 : vector<8x8xf32>
    %c1_29 = arith.constant 1 : index
    %43 = memref.load %arg5[%c1_29] : memref<8xf32, #tpu.memory_space<smem>>
    %44 = vector.extract_strided_slice %32 {offsets = [1, 0, 0], sizes = [1, 8, 8], strides = [1, 1, 1]} : vector<8x8x8xf32> to vector<1x8x8xf32>
    %45 = vector.shape_cast %44 : vector<1x8x8xf32> to vector<8x8xf32>
    %46 = vector.broadcast %43 : f32 to vector<8x8xf32>
    %47 = arith.mulf %46, %45 : vector<8x8xf32>
    %48 = arith.addf %42, %47 : vector<8x8xf32>
    %c2_30 = arith.constant 2 : index
    %49 = memref.load %arg5[%c2_30] : memref<8xf32, #tpu.memory_space<smem>>
    %50 = vector.extract_strided_slice %32 {offsets = [2, 0, 0], sizes = [1, 8, 8], strides = [1, 1, 1]} : vector<8x8x8xf32> to vector<1x8x8xf32>
    %51 = vector.shape_cast %50 : vector<1x8x8xf32> to vector<8x8xf32>
    %52 = vector.broadcast %49 : f32 to vector<8x8xf32>
    %53 = arith.mulf %52, %51 : vector<8x8xf32>
    %54 = arith.addf %48, %53 : vector<8x8xf32>
    %c3_31 = arith.constant 3 : index
    %55 = memref.load %arg5[%c3_31] : memref<8xf32, #tpu.memory_space<smem>>
    %56 = vector.extract_strided_slice %32 {offsets = [3, 0, 0], sizes = [1, 8, 8], strides = [1, 1, 1]} : vector<8x8x8xf32> to vector<1x8x8xf32>
    %57 = vector.shape_cast %56 : vector<1x8x8xf32> to vector<8x8xf32>
    %58 = vector.broadcast %55 : f32 to vector<8x8xf32>
    %59 = arith.mulf %58, %57 : vector<8x8xf32>
    %60 = arith.addf %54, %59 : vector<8x8xf32>
    %c4 = arith.constant 4 : index
    %61 = memref.load %arg5[%c4] : memref<8xf32, #tpu.memory_space<smem>>
    %62 = vector.extract_strided_slice %32 {offsets = [4, 0, 0], sizes = [1, 8, 8], strides = [1, 1, 1]} : vector<8x8x8xf32> to vector<1x8x8xf32>
    %63 = vector.shape_cast %62 : vector<1x8x8xf32> to vector<8x8xf32>
    %64 = vector.broadcast %61 : f32 to vector<8x8xf32>
    %65 = arith.mulf %64, %63 : vector<8x8xf32>
    %66 = arith.addf %60, %65 : vector<8x8xf32>
    %c5 = arith.constant 5 : index
    %67 = memref.load %arg5[%c5] : memref<8xf32, #tpu.memory_space<smem>>
    %68 = vector.extract_strided_slice %32 {offsets = [5, 0, 0], sizes = [1, 8, 8], strides = [1, 1, 1]} : vector<8x8x8xf32> to vector<1x8x8xf32>
    %69 = vector.shape_cast %68 : vector<1x8x8xf32> to vector<8x8xf32>
    %70 = vector.broadcast %67 : f32 to vector<8x8xf32>
    %71 = arith.mulf %70, %69 : vector<8x8xf32>
    %72 = arith.addf %66, %71 : vector<8x8xf32>
    %c6 = arith.constant 6 : index
    %73 = memref.load %arg5[%c6] : memref<8xf32, #tpu.memory_space<smem>>
    %74 = vector.extract_strided_slice %32 {offsets = [6, 0, 0], sizes = [1, 8, 8], strides = [1, 1, 1]} : vector<8x8x8xf32> to vector<1x8x8xf32>
    %75 = vector.shape_cast %74 : vector<1x8x8xf32> to vector<8x8xf32>
    %76 = vector.broadcast %73 : f32 to vector<8x8xf32>
    %77 = arith.mulf %76, %75 : vector<8x8xf32>
    %78 = arith.addf %72, %77 : vector<8x8xf32>
    %c7 = arith.constant 7 : index
    %79 = memref.load %arg5[%c7] : memref<8xf32, #tpu.memory_space<smem>>
    %80 = vector.extract_strided_slice %32 {offsets = [7, 0, 0], sizes = [1, 8, 8], strides = [1, 1, 1]} : vector<8x8x8xf32> to vector<1x8x8xf32>
    %81 = vector.shape_cast %80 : vector<1x8x8xf32> to vector<8x8xf32>
    %82 = vector.broadcast %79 : f32 to vector<8x8xf32>
    %83 = arith.mulf %82, %81 : vector<8x8xf32>
    %84 = arith.addf %78, %83 : vector<8x8xf32>
    %85 = arith.mulf %84, %84 : vector<8x8xf32>
    %cst_32 = arith.constant dense<0.000000e+00> : vector<8xf32>
    %86 = vector.multi_reduction <add>, %85, %cst_32 [1] : vector<8x8xf32> to vector<8xf32>
    %87 = vector.shape_cast %86 : vector<8xf32> to vector<8x1xf32>
    %cst_33 = arith.constant dense<0.000000e+00> : vector<1xf32>
    %88 = vector.multi_reduction <add>, %87, %cst_33 [0] : vector<8x1xf32> to vector<1xf32>
    %89 = vector.shape_cast %88 : vector<1xf32> to vector<1x1xf32>
    %90 = math.sqrt %89 : vector<1x1xf32>
    %cst_34 = arith.constant 9.99999996E-13 : f32
    %91 = vector.broadcast %cst_34 : f32 to vector<1x1xf32>
    %92 = arith.maximumf %90, %91 : vector<1x1xf32>
    %cst_35 = arith.constant 1.000000e+00 : f32
    %93 = vector.broadcast %cst_35 : f32 to vector<1x1xf32>
    %94 = arith.divf %93, %92 : vector<1x1xf32>
    %95 = vector.broadcast %94 : vector<1x1xf32> to vector<8x8xf32>
    %96 = arith.mulf %84, %95 : vector<8x8xf32>
    %cst_36 = arith.constant 0.000000e+00 : f32
    %97 = vector.broadcast %cst_36 : f32 to vector<8x10x10xf32>
    %c0_37 = arith.constant 0 : index
    %c0_38 = arith.constant 0 : index
    %c0_39 = arith.constant 0 : index
    %98 = vector.load %arg9[%c0_37, %c0_38, %c0_39] : memref<8x10x10xf32, #tpu.memory_space<vmem>>, vector<8x10x10xf32>
    tpu.vector_store %arg9[%c0_37, %c0_38, %c0_39], %97 {strides = array<i32>} : memref<8x10x10xf32, #tpu.memory_space<vmem>>, vector<8x10x10xf32>,
    %c0_40 = arith.constant 0 : index
    %c1_41 = arith.constant 1 : index
    %c1_42 = arith.constant 1 : index
    %99 = vector.load %arg9[%c0_40, %c1_41, %c1_42] : memref<8x10x10xf32, #tpu.memory_space<vmem>>, vector<8x8x8xf32>
    tpu.vector_store %arg9[%c0_40, %c1_41, %c1_42], %32 {strides = array<i32>} : memref<8x10x10xf32, #tpu.memory_space<vmem>>, vector<8x8x8xf32>,
    %cst_43 = arith.constant 0.000000e+00 : f32
    %100 = vector.broadcast %cst_43 : f32 to vector<8x8x8xf32>
    %c0_44 = arith.constant 0 : index
    %c0_45 = arith.constant 0 : index
    %c0_46 = arith.constant 0 : index
    %c0_47 = arith.constant 0 : index
    %101 = vector.load %arg4[%c0_44, %c0_45, %c0_46, %c0_47] : memref<9x8x1x1xf32, #tpu.memory_space<vmem>>, vector<1x8x1x1xf32>
    %102 = vector.shape_cast %101 : vector<1x8x1x1xf32> to vector<8x1x1xf32>
    %c0_48 = arith.constant 0 : index
    %c0_49 = arith.constant 0 : index
    %c0_50 = arith.constant 0 : index
    %103 = vector.load %arg9[%c0_48, %c0_49, %c0_50] : memref<8x10x10xf32, #tpu.memory_space<vmem>>, vector<8x8x8xf32>
    %104 = vector.broadcast %102 : vector<8x1x1xf32> to vector<8x8x8xf32>
    %105 = arith.mulf %104, %103 : vector<8x8x8xf32>
    %106 = arith.addf %100, %105 : vector<8x8x8xf32>
    %c1_51 = arith.constant 1 : index
    %c0_52 = arith.constant 0 : index
    %c0_53 = arith.constant 0 : index
    %c0_54 = arith.constant 0 : index
    %107 = vector.load %arg4[%c1_51, %c0_52, %c0_53, %c0_54] : memref<9x8x1x1xf32, #tpu.memory_space<vmem>>, vector<1x8x1x1xf32>
    %108 = vector.shape_cast %107 : vector<1x8x1x1xf32> to vector<8x1x1xf32>
    %c0_55 = arith.constant 0 : index
    %c0_56 = arith.constant 0 : index
    %c1_57 = arith.constant 1 : index
    %109 = vector.load %arg9[%c0_55, %c0_56, %c1_57] : memref<8x10x10xf32, #tpu.memory_space<vmem>>, vector<8x8x8xf32>
    %110 = vector.broadcast %108 : vector<8x1x1xf32> to vector<8x8x8xf32>
    %111 = arith.mulf %110, %109 : vector<8x8x8xf32>
    %112 = arith.addf %106, %111 : vector<8x8x8xf32>
    %c2_58 = arith.constant 2 : index
    %c0_59 = arith.constant 0 : index
    %c0_60 = arith.constant 0 : index
    %c0_61 = arith.constant 0 : index
    %113 = vector.load %arg4[%c2_58, %c0_59, %c0_60, %c0_61] : memref<9x8x1x1xf32, #tpu.memory_space<vmem>>, vector<1x8x1x1xf32>
    %114 = vector.shape_cast %113 : vector<1x8x1x1xf32> to vector<8x1x1xf32>
    %c0_62 = arith.constant 0 : index
    %c0_63 = arith.constant 0 : index
    %c2_64 = arith.constant 2 : index
    %115 = vector.load %arg9[%c0_62, %c0_63, %c2_64] : memref<8x10x10xf32, #tpu.memory_space<vmem>>, vector<8x8x8xf32>
    %116 = vector.broadcast %114 : vector<8x1x1xf32> to vector<8x8x8xf32>
    %117 = arith.mulf %116, %115 : vector<8x8x8xf32>
    %118 = arith.addf %112, %117 : vector<8x8x8xf32>
    %c3_65 = arith.constant 3 : index
    %c0_66 = arith.constant 0 : index
    %c0_67 = arith.constant 0 : index
    %c0_68 = arith.constant 0 : index
    %119 = vector.load %arg4[%c3_65, %c0_66, %c0_67, %c0_68] : memref<9x8x1x1xf32, #tpu.memory_space<vmem>>, vector<1x8x1x1xf32>
    %120 = vector.shape_cast %119 : vector<1x8x1x1xf32> to vector<8x1x1xf32>
    %c0_69 = arith.constant 0 : index
    %c1_70 = arith.constant 1 : index
    %c0_71 = arith.constant 0 : index
    %121 = vector.load %arg9[%c0_69, %c1_70, %c0_71] : memref<8x10x10xf32, #tpu.memory_space<vmem>>, vector<8x8x8xf32>
    %122 = vector.broadcast %120 : vector<8x1x1xf32> to vector<8x8x8xf32>
    %123 = arith.mulf %122, %121 : vector<8x8x8xf32>
    %124 = arith.addf %118, %123 : vector<8x8x8xf32>
    %c4_72 = arith.constant 4 : index
    %c0_73 = arith.constant 0 : index
    %c0_74 = arith.constant 0 : index
    %c0_75 = arith.constant 0 : index
    %125 = vector.load %arg4[%c4_72, %c0_73, %c0_74, %c0_75] : memref<9x8x1x1xf32, #tpu.memory_space<vmem>>, vector<1x8x1x1xf32>
    %126 = vector.shape_cast %125 : vector<1x8x1x1xf32> to vector<8x1x1xf32>
    %c0_76 = arith.constant 0 : index
    %c1_77 = arith.constant 1 : index
    %c1_78 = arith.constant 1 : index
    %127 = vector.load %arg9[%c0_76, %c1_77, %c1_78] : memref<8x10x10xf32, #tpu.memory_space<vmem>>, vector<8x8x8xf32>
    %128 = vector.broadcast %126 : vector<8x1x1xf32> to vector<8x8x8xf32>
    %129 = arith.mulf %128, %127 : vector<8x8x8xf32>
    %130 = arith.addf %124, %129 : vector<8x8x8xf32>
    %c5_79 = arith.constant 5 : index
    %c0_80 = arith.constant 0 : index
    %c0_81 = arith.constant 0 : index
    %c0_82 = arith.constant 0 : index
    %131 = vector.load %arg4[%c5_79, %c0_80, %c0_81, %c0_82] : memref<9x8x1x1xf32, #tpu.memory_space<vmem>>, vector<1x8x1x1xf32>
    %132 = vector.shape_cast %131 : vector<1x8x1x1xf32> to vector<8x1x1xf32>
    %c0_83 = arith.constant 0 : index
    %c1_84 = arith.constant 1 : index
    %c2_85 = arith.constant 2 : index
    %133 = vector.load %arg9[%c0_83, %c1_84, %c2_85] : memref<8x10x10xf32, #tpu.memory_space<vmem>>, vector<8x8x8xf32>
    %134 = vector.broadcast %132 : vector<8x1x1xf32> to vector<8x8x8xf32>
    %135 = arith.mulf %134, %133 : vector<8x8x8xf32>
    %136 = arith.addf %130, %135 : vector<8x8x8xf32>
    %c6_86 = arith.constant 6 : index
    %c0_87 = arith.constant 0 : index
    %c0_88 = arith.constant 0 : index
    %c0_89 = arith.constant 0 : index
    %137 = vector.load %arg4[%c6_86, %c0_87, %c0_88, %c0_89] : memref<9x8x1x1xf32, #tpu.memory_space<vmem>>, vector<1x8x1x1xf32>
    %138 = vector.shape_cast %137 : vector<1x8x1x1xf32> to vector<8x1x1xf32>
    %c0_90 = arith.constant 0 : index
    %c2_91 = arith.constant 2 : index
    %c0_92 = arith.constant 0 : index
    %139 = vector.load %arg9[%c0_90, %c2_91, %c0_92] : memref<8x10x10xf32, #tpu.memory_space<vmem>>, vector<8x8x8xf32>
    %140 = vector.broadcast %138 : vector<8x1x1xf32> to vector<8x8x8xf32>
    %141 = arith.mulf %140, %139 : vector<8x8x8xf32>
    %142 = arith.addf %136, %141 : vector<8x8x8xf32>
    %c7_93 = arith.constant 7 : index
    %c0_94 = arith.constant 0 : index
    %c0_95 = arith.constant 0 : index
    %c0_96 = arith.constant 0 : index
    %143 = vector.load %arg4[%c7_93, %c0_94, %c0_95, %c0_96] : memref<9x8x1x1xf32, #tpu.memory_space<vmem>>, vector<1x8x1x1xf32>
    %144 = vector.shape_cast %143 : vector<1x8x1x1xf32> to vector<8x1x1xf32>
    %c0_97 = arith.constant 0 : index
    %c2_98 = arith.constant 2 : index
    %c1_99 = arith.constant 1 : index
    %145 = vector.load %arg9[%c0_97, %c2_98, %c1_99] : memref<8x10x10xf32, #tpu.memory_space<vmem>>, vector<8x8x8xf32>
    %146 = vector.broadcast %144 : vector<8x1x1xf32> to vector<8x8x8xf32>
    %147 = arith.mulf %146, %145 : vector<8x8x8xf32>
    %148 = arith.addf %142, %147 : vector<8x8x8xf32>
    %c8 = arith.constant 8 : index
    %c0_100 = arith.constant 0 : index
    %c0_101 = arith.constant 0 : index
    %c0_102 = arith.constant 0 : index
    %149 = vector.load %arg4[%c8, %c0_100, %c0_101, %c0_102] : memref<9x8x1x1xf32, #tpu.memory_space<vmem>>, vector<1x8x1x1xf32>
    %150 = vector.shape_cast %149 : vector<1x8x1x1xf32> to vector<8x1x1xf32>
    %c0_103 = arith.constant 0 : index
    %c2_104 = arith.constant 2 : index
    %c2_105 = arith.constant 2 : index
    %151 = vector.load %arg9[%c0_103, %c2_104, %c2_105] : memref<8x10x10xf32, #tpu.memory_space<vmem>>, vector<8x8x8xf32>
    %152 = vector.broadcast %150 : vector<8x1x1xf32> to vector<8x8x8xf32>
    %153 = arith.mulf %152, %151 : vector<8x8x8xf32>
    %154 = arith.addf %148, %153 : vector<8x8x8xf32>
    %155 = arith.mulf %154, %154 : vector<8x8x8xf32>
    %cst_106 = arith.constant dense<0.000000e+00> : vector<8x8xf32>
    %156 = vector.multi_reduction <add>, %155, %cst_106 [2] : vector<8x8x8xf32> to vector<8x8xf32>
    %157 = vector.shape_cast %156 : vector<8x8xf32> to vector<8x8x1xf32>
    %cst_107 = arith.constant dense<0.000000e+00> : vector<8x1xf32>
    %158 = vector.multi_reduction <add>, %157, %cst_107 [1] : vector<8x8x1xf32> to vector<8x1xf32>
    %159 = vector.shape_cast %158 : vector<8x1xf32> to vector<8x1x1xf32>
    %160 = math.sqrt %159 : vector<8x1x1xf32>
    %cst_108 = arith.constant 9.99999996E-13 : f32
    %161 = vector.broadcast %cst_108 : f32 to vector<8x1x1xf32>
    %162 = arith.maximumf %160, %161 : vector<8x1x1xf32>
    %cst_109 = arith.constant 1.000000e+00 : f32
    %163 = vector.broadcast %cst_109 : f32 to vector<8x1x1xf32>
    %164 = arith.divf %163, %162 : vector<8x1x1xf32>
    %165 = vector.shape_cast %96 : vector<8x8xf32> to vector<1x8x8xf32>
    %166 = vector.broadcast %165 : vector<1x8x8xf32> to vector<8x8x8xf32>
    %167 = arith.mulf %166, %154 : vector<8x8x8xf32>
    %cst_110 = arith.constant dense<0.000000e+00> : vector<8x8xf32>
    %168 = vector.multi_reduction <add>, %167, %cst_110 [2] : vector<8x8x8xf32> to vector<8x8xf32>
    %169 = vector.shape_cast %168 : vector<8x8xf32> to vector<8x8x1xf32>
    %cst_111 = arith.constant dense<0.000000e+00> : vector<8x1xf32>
    %170 = vector.multi_reduction <add>, %169, %cst_111 [1] : vector<8x8x1xf32> to vector<8x1xf32>
    %171 = vector.shape_cast %170 : vector<8x1xf32> to vector<8x1x1xf32>
    %172 = arith.mulf %171, %164 : vector<8x1x1xf32>
    %cst_112 = arith.constant 3.200000e+01 : f32
    %173 = vector.broadcast %cst_112 : f32 to vector<8x1x1xf32>
    %174 = arith.mulf %172, %173 : vector<8x1x1xf32>
    %cst_113 = arith.constant dense<0xFF800000> : vector<1x1xf32>
    %175 = vector.multi_reduction <maximumf>, %174, %cst_113 [0] : vector<8x1x1xf32> to vector<1x1xf32>
    %176 = vector.shape_cast %175 : vector<1x1xf32> to vector<1x1x1xf32>
    %177 = vector.broadcast %176 : vector<1x1x1xf32> to vector<8x1x1xf32>
    %178 = arith.subf %174, %177 : vector<8x1x1xf32>
    %179 = math.exp %178 : vector<8x1x1xf32>
    %cst_114 = arith.constant dense<0.000000e+00> : vector<1x1xf32>
    %180 = vector.multi_reduction <add>, %179, %cst_114 [0] : vector<8x1x1xf32> to vector<1x1xf32>
    %181 = vector.shape_cast %180 : vector<1x1xf32> to vector<1x1x1xf32>
    %182 = vector.broadcast %181 : vector<1x1x1xf32> to vector<8x1x1xf32>
    %183 = arith.divf %179, %182 : vector<8x1x1xf32>
    %c0_115 = arith.constant 0 : index
    %c0_116 = arith.constant 0 : index
    %c0_117 = arith.constant 0 : index
    %c0_118 = arith.constant 0 : index
    %184 = vector.load %arg7[%c0_115, %c0_116, %c0_117, %c0_118] : memref<1x8x1x1xf32, #tpu.memory_space<vmem>>, vector<1x8x1x1xf32>
    %185 = vector.shape_cast %184 : vector<1x8x1x1xf32> to vector<8x1x1xf32>
    %186 = vector.shape_cast %183 : vector<8x1x1xf32> to vector<1x8x1x1xf32>
    tpu.vector_store %arg7[%c0_115, %c0_116, %c0_117, %c0_118], %186 {strides = array<i32>} : memref<1x8x1x1xf32, #tpu.memory_space<vmem>>, vector<1x8x1x1xf32>,
    %cst_119 = arith.constant 1.000000e+00 : f32
    %187 = vector.broadcast %cst_119 : f32 to vector<8x1x1xf32>
    %188 = arith.addf %187, %183 : vector<8x1x1xf32>
    %c0_120 = arith.constant 0 : index
    %c0_121 = arith.constant 0 : index
    %c0_122 = arith.constant 0 : index
    %c0_123 = arith.constant 0 : index
    %c0_124 = arith.constant 0 : index
    %189 = vector.load %arg1[%c0_120, %c0_121, %c0_122, %c0_123, %c0_124] : memref<1x8x4x8x8xf32, #tpu.memory_space<vmem>>, vector<1x8x1x8x8xf32>
    %190 = vector.shape_cast %189 : vector<1x8x1x8x8xf32> to vector<8x8x8xf32>
    %191 = vector.broadcast %188 : vector<8x1x1xf32> to vector<8x8x8xf32>
    %192 = arith.mulf %190, %191 : vector<8x8x8xf32>
    %c0_125 = arith.constant 0 : index
    %c0_126 = arith.constant 0 : index
    %c0_127 = arith.constant 0 : index
    %c0_128 = arith.constant 0 : index
    %c0_129 = arith.constant 0 : index
    %193 = vector.load %arg6[%c0_125, %c0_126, %c0_127, %c0_128, %c0_129] : memref<1x8x4x8x8xf32, #tpu.memory_space<vmem>>, vector<1x8x1x8x8xf32>
    %194 = vector.shape_cast %193 : vector<1x8x1x8x8xf32> to vector<8x8x8xf32>
    %195 = vector.shape_cast %192 : vector<8x8x8xf32> to vector<1x8x1x8x8xf32>
    tpu.vector_store %arg6[%c0_125, %c0_126, %c0_127, %c0_128, %c0_129], %195 {strides = array<i32>} : memref<1x8x4x8x8xf32, #tpu.memory_space<vmem>>, vector<1x8x1x8x8xf32>,
    %c0_130 = arith.constant 0 : index
    %c0_131 = arith.constant 0 : index
    %c1_132 = arith.constant 1 : index
    %c0_133 = arith.constant 0 : index
    %c0_134 = arith.constant 0 : index
    %196 = vector.load %arg1[%c0_130, %c0_131, %c1_132, %c0_133, %c0_134] : memref<1x8x4x8x8xf32, #tpu.memory_space<vmem>>, vector<1x8x1x8x8xf32>
    %197 = vector.shape_cast %196 : vector<1x8x1x8x8xf32> to vector<8x8x8xf32>
    %198 = vector.broadcast %188 : vector<8x1x1xf32> to vector<8x8x8xf32>
    %199 = arith.mulf %197, %198 : vector<8x8x8xf32>
    %c0_135 = arith.constant 0 : index
    %c0_136 = arith.constant 0 : index
    %c1_137 = arith.constant 1 : index
    %c0_138 = arith.constant 0 : index
    %c0_139 = arith.constant 0 : index
    %200 = vector.load %arg6[%c0_135, %c0_136, %c1_137, %c0_138, %c0_139] : memref<1x8x4x8x8xf32, #tpu.memory_space<vmem>>, vector<1x8x1x8x8xf32>
    %201 = vector.shape_cast %200 : vector<1x8x1x8x8xf32> to vector<8x8x8xf32>
    %202 = vector.shape_cast %199 : vector<8x8x8xf32> to vector<1x8x1x8x8xf32>
    tpu.vector_store %arg6[%c0_135, %c0_136, %c1_137, %c0_138, %c0_139], %202 {strides = array<i32>} : memref<1x8x4x8x8xf32, #tpu.memory_space<vmem>>, vector<1x8x1x8x8xf32>,
    %c0_140 = arith.constant 0 : index
    %c0_141 = arith.constant 0 : index
    %c2_142 = arith.constant 2 : index
    %c0_143 = arith.constant 0 : index
    %c0_144 = arith.constant 0 : index
    %203 = vector.load %arg1[%c0_140, %c0_141, %c2_142, %c0_143, %c0_144] : memref<1x8x4x8x8xf32, #tpu.memory_space<vmem>>, vector<1x8x1x8x8xf32>
    %204 = vector.shape_cast %203 : vector<1x8x1x8x8xf32> to vector<8x8x8xf32>
    %205 = vector.broadcast %188 : vector<8x1x1xf32> to vector<8x8x8xf32>
    %206 = arith.mulf %204, %205 : vector<8x8x8xf32>
    %c0_145 = arith.constant 0 : index
    %c0_146 = arith.constant 0 : index
    %c2_147 = arith.constant 2 : index
    %c0_148 = arith.constant 0 : index
    %c0_149 = arith.constant 0 : index
    %207 = vector.load %arg6[%c0_145, %c0_146, %c2_147, %c0_148, %c0_149] : memref<1x8x4x8x8xf32, #tpu.memory_space<vmem>>, vector<1x8x1x8x8xf32>
    %208 = vector.shape_cast %207 : vector<1x8x1x8x8xf32> to vector<8x8x8xf32>
    %209 = vector.shape_cast %206 : vector<8x8x8xf32> to vector<1x8x1x8x8xf32>
    tpu.vector_store %arg6[%c0_145, %c0_146, %c2_147, %c0_148, %c0_149], %209 {strides = array<i32>} : memref<1x8x4x8x8xf32, #tpu.memory_space<vmem>>, vector<1x8x1x8x8xf32>,
    %c0_150 = arith.constant 0 : index
    %c0_151 = arith.constant 0 : index
    %c3_152 = arith.constant 3 : index
    %c0_153 = arith.constant 0 : index
    %c0_154 = arith.constant 0 : index
    %210 = vector.load %arg1[%c0_150, %c0_151, %c3_152, %c0_153, %c0_154] : memref<1x8x4x8x8xf32, #tpu.memory_space<vmem>>, vector<1x8x1x8x8xf32>
    %211 = vector.shape_cast %210 : vector<1x8x1x8x8xf32> to vector<8x8x8xf32>
    %212 = vector.broadcast %188 : vector<8x1x1xf32> to vector<8x8x8xf32>
    %213 = arith.mulf %211, %212 : vector<8x8x8xf32>
    %c0_155 = arith.constant 0 : index
    %c0_156 = arith.constant 0 : index
    %c3_157 = arith.constant 3 : index
    %c0_158 = arith.constant 0 : index
    %c0_159 = arith.constant 0 : index
    %214 = vector.load %arg6[%c0_155, %c0_156, %c3_157, %c0_158, %c0_159] : memref<1x8x4x8x8xf32, #tpu.memory_space<vmem>>, vector<1x8x1x8x8xf32>
    %215 = vector.shape_cast %214 : vector<1x8x1x8x8xf32> to vector<8x8x8xf32>
    %216 = vector.shape_cast %213 : vector<8x8x8xf32> to vector<1x8x1x8x8xf32>
    tpu.vector_store %arg6[%c0_155, %c0_156, %c3_157, %c0_158, %c0_159], %216 {strides = array<i32>} : memref<1x8x4x8x8xf32, #tpu.memory_space<vmem>>, vector<1x8x1x8x8xf32>,
    return
  }
  func.func @transform_0(%arg0: i32) -> (i32, i32, i32, i32, i32) {
    %c0_i32 = arith.constant 0 : i32
    %c0_i32_0 = arith.constant 0 : i32
    %c0_i32_1 = arith.constant 0 : i32
    %c0_i32_2 = arith.constant 0 : i32
    %c0_i32_3 = arith.constant 0 : i32
    return %arg0, %c0_i32, %c0_i32_0, %c0_i32_1, %c0_i32_2 : i32, i32, i32, i32, i32
  }
  func.func @transform_1(%arg0: i32) -> i32 {
    %c0_i32 = arith.constant 0 : i32
    %c0_i32_0 = arith.constant 0 : i32
    return %c0_i32 : i32
  }
  func.func @transform_2(%arg0: i32) -> i32 {
    %c0_i32 = arith.constant 0 : i32
    %c0_i32_0 = arith.constant 0 : i32
    return %c0_i32 : i32
  }
  func.func @transform_3(%arg0: i32) -> (i32, i32, i32, i32) {
    %c0_i32 = arith.constant 0 : i32
    %c0_i32_0 = arith.constant 0 : i32
    %c0_i32_1 = arith.constant 0 : i32
    %c0_i32_2 = arith.constant 0 : i32
    %c0_i32_3 = arith.constant 0 : i32
    return %c0_i32, %c0_i32_0, %c0_i32_1, %c0_i32_2 : i32, i32, i32, i32
  }
  func.func @transform_4(%arg0: i32) -> i32 {
    %c0_i32 = arith.constant 0 : i32
    %c0_i32_0 = arith.constant 0 : i32
    return %c0_i32 : i32
  }
  func.func @transform_5(%arg0: i32) -> (i32, i32, i32, i32, i32) {
    %c0_i32 = arith.constant 0 : i32
    %c0_i32_0 = arith.constant 0 : i32
    %c0_i32_1 = arith.constant 0 : i32
    %c0_i32_2 = arith.constant 0 : i32
    %c0_i32_3 = arith.constant 0 : i32
    return %arg0, %c0_i32, %c0_i32_0, %c0_i32_1, %c0_i32_2 : i32, i32, i32, i32, i32
  }
  func.func @transform_6(%arg0: i32) -> (i32, i32, i32, i32) {
    %c0_i32 = arith.constant 0 : i32
    %c0_i32_0 = arith.constant 0 : i32
    %c0_i32_1 = arith.constant 0 : i32
    %c0_i32_2 = arith.constant 0 : i32
    return %arg0, %c0_i32, %c0_i32_0, %c0_i32_1 : i32, i32, i32, i32
  }
  func.func @transform_7(%arg0: i32) -> (i32, i32, i32, i32) {
    %c0_i32 = arith.constant 0 : i32
    %c0_i32_0 = arith.constant 0 : i32
    %c0_i32_1 = arith.constant 0 : i32
    %c0_i32_2 = arith.constant 0 : i32
    return %arg0, %c0_i32, %c0_i32_0, %c0_i32_1 : i32, i32, i32, i32
  }
}

</mosaic_0001>

<bundles_post_ra>
// kernel: tpu_custom_call.1
= control target key start
LH: loop header
LB: loop body
LE: loop exit
PB: predicated region body
PF: predicated region fallthrough
CT: control target
= control target key end

     0   :  { %s4145_s0 = inlined_call_operand.hbm [shape: f32[2,8,4,8,8], index: 0, kind: input, shape index: {}]   ;;  %s4146_s1 = inlined_call_operand.vmem [shape: f32[4], index: 1, kind: input, shape index: {}]   ;;  %s4147_s2 = inlined_call_operand.<no memory space> [shape: f32[1], index: 2, kind: input, shape index: {}]   ;;  %s4148_s3 = inlined_call_operand.vmem [shape: f32[9,8,1,1], index: 3, kind: input, shape index: {}]   ;;  %s4149_s4 = inlined_call_operand.vmem [shape: f32[8], index: 4, kind: input, shape index: {}]   ;;  %s4150_s5 = inlined_call_operand.hbm [shape: f32[2,8,4,8,8], index: 5, kind: output, shape index: {0}]   ;;  %s4151_s6 = inlined_call_operand.vmem [shape: f32[2,8,1,1], index: 6, kind: output, shape index: {1}]   ;;  %s4152_s7 = inlined_call_operand.hbm [shape: f32[2,8,8,8], index: 7, kind: output, shape index: {2}]  }
   0x1   :  { %4155 = sst [smem:[#allocation21_spill]] %s4146_s1 }
   0x2   :  { %4156 = sst [smem:[#allocation22_spill]] %s4149_s4 }
   0x3   :  { %13 = sst [smem:[#allocation3]] %s4147_s2 }
   0x4   :  { %14 = vsyncpa [#allocation5], 0 }
   0x5   :  { %16 = vsyncpa [#allocation5 + $0x1], 0 }
   0x6   :  { %17 = vsyncpa [#allocation7], 0 }
   0x7   :  { %18 = vsyncpa [#allocation10], 0 }
   0x8   :  { %19 = vsyncpa [#allocation6], 0 }
   0x9   :  { %21 = vsyncpa [#allocation6 + $0x1], 0 }
   0xa   :  { %22 = vsyncpa [#allocation13], 0 }
   0xb   :  { %24 = vsyncpa [#allocation13 + $0x1], 0  ;;  %s2877_s26 = smov 0   ;;  %s2879_s27 = smov 0  }
   0xc   :  { %s2881_s28 = smov 0   ;;  %s2883_s29 = smov 0  }
   0xd LB: > { %s2898_s2 = sadd.s32 4294967295, %s2821_s29   ;;  %s2273_s30 = sadd.s32 4294967294, %s2821_s29   ;;  %s2821_s29 = sphi %s2883_s29, %s4190_s29   ;;  %s2817_s28 = sphi %s2881_s28, %s4194_s28   ;;  %s2813_s27 = sphi %s2879_s27, %s4193_s27   ;;  %s2809_s26 = sphi %s2877_s26, %s4192_s26  }
   0xe   : > { %s2902_s8 = sadd.s32 1, %s2821_s29   ;;  %s37_s9 = sadd.s32 1, %s2817_s28 }
   0xf   : > { %4157 = sst [smem:[#allocation19_spill]] %s2902_s8  ;;  %s34_s10 = ssub.s32 %s2821_s29, %s2902_s8 }
  0x10   : > { %p44_p0 = scmp.ne.s32.totalorder %s2817_s28, %s2813_s27  ;;  %p35_p1 = scmp.eq.s32.totalorder %s34_s10, 0 }
  0x11   : > { %p45_p2 = scmp.eq.s32.totalorder %s2821_s29, 0  ;;  %p50_p3 = scmp.ne.s32.totalorder %s2813_s27, %s2809_s26 }
  0x12   : > { %p51_p4 = scmp.eq.s32.totalorder %s2898_s2, 0  ;;  %p158_p7 = scmp.eq.s32.totalorder %s2898_s2, 1 }
  0x13   : > { %s2914_s11 = scalar_select %p35_p1, %s2817_s28, %s37_s9  }
  0x14   : > { %p2916_p5 = por %p45_p2, %p44_p0  ;;  %p2922_p6 = por %p51_p4, %p50_p3 }
  0x15   : > { %4158 = sst [smem:[#allocation20_spill]] %s2914_s11  ;;  %p164_p8 = scmp.eq.s32.totalorder %s2273_s30, 1 }
  0x16   : > { %p2274_p9 = scmp.ge.s32.totalorder %s2821_s29, 1  ;;  %p223_p10 = scmp.lt.s32.totalorder %s2821_s29, 3 }
  0x17   : > { %p2929_p11 = por %p158_p7, %p44_p0  ;;  %p2933_p12 = por %p164_p8, %p50_p3 }
  0x18   : > { %p2937_p13 = pnand %p2274_p9, %p223_p10  ;;  %s4164_s1 = sld [smem:[#allocation21_spill]] }
  0x19   : > { %p2479_p2 = scmp.lt.s32.totalorder %s2821_s29, 2  ;;  %s4165_s4 = sld [smem:[#allocation22_spill]] }
  0x1a   : > { %p2459_p1 = pneg %p2937_p13  ;;  %s2823_s24 = smov [#allocation8]  }
  0x1b   : > { %p2955_p7 = pnand %p2479_p2, %p2916_p5  ;;  %s262_s25 = sand.u32 1, %s2817_s28  }
  0x1c   : > { %p2460_p3 = pnand %p2459_p1, %p51_p4  ;;  %s2824_s30 = smov [#allocation9]  }
  0x1d   : > { %s2278_s9 = sshll.u32 %s262_s25, 8  ;;  %s2442_s10 = sshll.u32 %s2821_s29, 8 }
  0x1e   : > { %s235_s19 = sshll.u32 %s4164_s1, 4  ;;  %s271_s1 = scalar_lea.hbm %s4145_s0, %s2442_s10  ;;  %s236_s19 = int_to_ptr.vmem [resolvable:$true] %s235_s19 }
  0x1f   : > { %s251_s22 = sshll.u32 %s4165_s4, 4  ;;  %s266_s20 = scalar_lea.vmem [#allocation4], %s2278_s9  ;;  %s252_s22 = int_to_ptr.vmem [resolvable:$true] %s251_s22 }
  0x20   : > { %2462 = dma.vmem_to_smem (!%p2460_p3), %s236_s19, 16, %s2823_s24, [#allocation7]  }
  0x21   : > { %2465 = dma.vmem_to_smem (!%p2460_p3), %s252_s22, 16, %s2824_s30, [#allocation10]  }
  0x22   : > { %s274_s21 = sshll.u32 %s266_s20, 4  ;;  %s272_s12 = sshll.u32 %s271_s1, 4  ;;  %s275_s21 = int_to_ptr.vmem [resolvable:$true] %s274_s21  ;;  %s273_s12 = int_to_ptr.hbm [resolvable:$true] %s272_s12 }
  0x23   : > { %s263_s4 = scalar_lea.sflag [#allocation5], %s262_s25  ;;  %s2685_s11 = sshra.s32 %s273_s12, 4  ;;  %s2686_s11 = int_to_ptr.hbm [resolvable:$true] %s2685_s11 }
  0x24   : > { %s2687_s8 = scalar_lea.hbm %s2686_s11, 256  ;;  %p2689_p8 = pneg %p2955_p7 }
  0x25   : > { %p2688_p5 = scmp.ne.s32.totalorder %s2686_s11, %s2687_s8  ;;  %s2692_s24 = scalar_lea.hbm %s4145_s0, 512 }
  0x26   : > { %p2693_p1 = scmp.lt.s32.totalorder %s2686_s11, %s4145_s0  ;;  %p2694_p2 = scmp.lt.s32.totalorder %s2692_s24, %s2687_s8 }
  0x27   : > { %p2690_p9 = pnand %p2689_p8, %p2688_p5 }
  0x28   : > { %p2695_p3 = por %p2694_p2, %p2693_p1 }
  0x29   : > { %p2691_p10 = pneg %p2690_p9 }
  0x2b   : > { %p2696_p0 = pnand %p2695_p3, %p2691_p10 }
  0x2d   : > { %2699 = shalt.err (!%p2696_p0)
}
  0x2e   : > { %s2825_s1 = smov 128   ;;  %s2826_s25 = smov 8  }
  0x2f   : > { %2469 = dma.hbm_to_vmem [thread:$0]  (!%p2955_p7), %s273_s12, 4096, %s275_s21, %s263_s4, %s2825_s1, %s2825_s1, %s2826_s25  }
  0x30   : > { %286 = sbr.rel (%p2937_p13) target bundleno = 1143 (0x477), region = 40  ;;  %s2977_s9 = sand.u32 (!%p2937_p13), 1, %s2813_s27  }
  0x31   : > { %s2282_s11 = sshll.u32 (!%p2937_p13), %s2977_s9, 8  ;;  %s289_s8 = scalar_lea.sflag (!%p2937_p13), [#allocation5], %s2977_s9 }
  0x32   : > { %s2983_s17 = scalar_lea.vmem (!%p2937_p13), [#allocation4], %s2282_s11 }
  0x35   : > { %2788 = dma.done.wait (%p2922_p6), %s289_s8, 4096  }
  0x36   : > { %2790 = vsyncadd (%p2922_p6), %s289_s8, 4294963200 }
  0x37   : > { %2792 = dma.done.wait (%p51_p4), [#allocation7], 16  }
  0x38   : > { %2794 = vsyncadd (%p51_p4), [#allocation7], 4294967280 }
  0x39   : > { %2796 = dma.done.wait (%p51_p4), [#allocation10], 16  }
  0x3a   : > { %2798 = vsyncadd (%p51_p4), [#allocation10], 4294967280 }
  0x3b   : > { %308 = sfence }
  0x3c   : > { %s348_s4 = sld [smem:[#allocation8]]  ;;  %v352_v0 = vld [vmem:[%s2983_s17 + $0x60] sm:$0xff]  ;;  %v2292_v1 = vld [vmem:[%s2983_s17 + $0x68] sm:$0xff]  ;;  %v2301_v4 = vld [vmem:[%s2983_s17 + $0x70] sm:$0xff]  ;;  %v2827_v7 = vmov 0   ;;  %s2286_s20 = sshll.u32 %s2977_s9, 6 }
  0x3d   : > { %s2288_s13 = sld [smem:[#allocation8 + $0x1]]  ;;  %v350_v2 = vld [vmem:[%s2983_s17 + $0x20] sm:$0xff]  ;;  %v2290_v5 = vld [vmem:[%s2983_s17 + $0x28] sm:$0xff]  ;;  %2527 = vset.pattern.permute.xlu0 %v2827_v7  ;;  %2526 = vset.pattern.permute.xlu2 %v2827_v7  ;;  %v2299_v9 = vld [vmem:[%s2983_s17 + $0x30] sm:$0xff]  ;;  %vm489_vm0 = vcmask 64512   ;;  %s2828_s12 = smov 1  }
  0x3e   : > { %s2297_s16 = sld [smem:[#allocation8 + $0x2]]  ;;  %v349_v3 = vld [vmem:[%s2983_s17] sm:$0xff]  ;;  %v2289_v6 = vld [vmem:[%s2983_s17 + $0x8] sm:$0xff]  ;;  %v2298_v10 = vld [vmem:[%s2983_s17 + $0x10] sm:$0xff]  ;;  %2528 = vset.pattern.permute.xlu1 %v2827_v7  ;;  %s3071_s19 = scalar_lea.vmem [#allocation12], %s2286_s20  ;;  %vm569_vm9 = vcmask 80896  }
  0x3f   : > { %s2306_s23 = sld [smem:[#allocation8 + $0x3]]  ;;  %v2310_v13 = vld [vmem:[%s2983_s17 + $0x78] sm:$0xff]  ;;  %v353_v26 = vld [vmem:[%s2983_s17 + $0x80] sm:$0xff]  ;;  %v2293_v30 = vld [vmem:[%s2983_s17 + $0x88] sm:$0xff]  ;;  %vm571_vm10 = vcmask 74752   ;;  %vm619_vm11 = vcmask 72712  }
  0x40   : > { %s3002_s18 = sld [smem:[#allocation3]]  ;;  %v2308_v19 = vld [vmem:[%s2983_s17 + $0x38] sm:$0xff]  ;;  %v2302_v31 = vld [vmem:[%s2983_s17 + $0x90] sm:$0xff]  ;;  %v351_v36 = vld [vmem:[%s2983_s17 + $0x40] sm:$0xff]  ;;  %s2086_s10 = scalar_lea.sflag [#allocation13], %s2977_s9 }
  0x41   : > { %v2307_v21 = vld [vmem:[%s2983_s17 + $0x18] sm:$0xff]  ;;  %s3037_s21 = sld [smem:[#allocation9 + $0x1]]  ;;  %v2291_v40 = vld [vmem:[%s2983_s17 + $0x48] sm:$0xff]  ;;  %v2300_v41 = vld [vmem:[%s2983_s17 + $0x50] sm:$0xff] }
  0x42   : > { %v3006_v8 = vstv %s348_s4  ;;  %v2311_v35 = vld [vmem:[%s2983_s17 + $0x98] sm:$0xff]  ;;  %v355_v54 = vld [vmem:[%s2983_s17 + $0xc0] sm:$0xff]  ;;  %v2295_v55 = vld [vmem:[%s2983_s17 + $0xc8] sm:$0xff]  ;;  %s3078_s22 = sld [smem:[#allocation9]] }
  0x43   : > { %v361_v11 = vmul.f32 %v3006_v8, %v352_v0  ;;  %v3011_v12 = vstv %s2288_s13  ;;  %v359_v14 = vmul.f32 %v3006_v8, %v350_v2  ;;  %v358_v15 = vmul.f32 %v3006_v8, %v349_v3  ;;  %v2309_v49 = vld [vmem:[%s2983_s17 + $0x58] sm:$0xff]  ;;  %s3084_s24 = sld [smem:[#allocation9 + $0x2]] }
  0x44   : > { %v388_v16 = vmul.f32 %v2292_v1, %v3011_v12  ;;  %v3017_v17 = vstv %s2297_s16  ;;  %v386_v18 = vmul.f32 %v2290_v5, %v3011_v12  ;;  %v385_v20 = vmul.f32 %v2289_v6, %v3011_v12  ;;  %v2304_v1 = vld [vmem:[%s2983_s17 + $0xd0] sm:$0xff]  ;;  %v2313_v2 = vld [vmem:[%s2983_s17 + $0xd8] sm:$0xff]  ;;  %v354_v6 = vld [vmem:[%s2983_s17 + $0xa0] sm:$0xff]  ;;  %s3108_s1 = sld [smem:[#allocation9 + $0x3]] }
  0x45   : > { %v415_v22 = vmul.f32 %v2301_v4, %v3017_v17  ;;  %v3024_v23 = vstv %s2306_s23  ;;  %v413_v24 = vmul.f32 %v2299_v9, %v3017_v17  ;;  %v412_v25 = vmul.f32 %v2298_v10, %v3017_v17  ;;  %s3117_s25 = sld [smem:[#allocation9 + $0x4]] }
  0x46   : > { %v396_v27 = vadd.f32 %v388_v16, %v361_v11  ;;  %v442_v28 = vmul.f32 %v2310_v13, %v3024_v23  ;;  %v394_v29 = vadd.f32 %v386_v18, %v359_v14  ;;  %v440_v32 = vmul.f32 %v2308_v19, %v3024_v23  ;;  %v2294_v13 = vld [vmem:[%s2983_s17 + $0xa8] sm:$0xff]  ;;  %v2303_v14 = vld [vmem:[%s2983_s17 + $0xb0] sm:$0xff]  ;;  %v2312_v19 = vld [vmem:[%s2983_s17 + $0xb8] sm:$0xff]  ;;  %s3120_s8 = sld [smem:[#allocation9 + $0x6]] }
  0x47   : > { %v393_v33 = vadd.f32 %v385_v20, %v358_v15  ;;  %v439_v34 = vmul.f32 %v2307_v21, %v3024_v23  ;;  %v362_v39 = vmul.f32 %v3006_v8, %v353_v26  ;;  %v3043_v42 = vstv %s3002_s18  ;;  %v356_v20 = vld [vmem:[%s2983_s17 + $0xe0] sm:$0xff]  ;;  %v2296_v26 = vld [vmem:[%s2983_s17 + $0xe8] sm:$0xff]  ;;  %s2319_s4 = sld [smem:[#allocation9 + $0x5]] }
  0x48   : > { %v423_v37 = vadd.f32 %v415_v22, %v396_v27  ;;  %v421_v38 = vadd.f32 %v413_v24, %v394_v29  ;;  %v389_v44 = vmul.f32 %v2293_v30, %v3011_v12  ;;  %v416_v45 = vmul.f32 %v2302_v31, %v3017_v17  ;;  %v2529_v29 = vld [vmem:[%s4148_s3 + $0x1] ss:$0 sm:$0xff]  ;;  %v2305_v30 = vld [vmem:[%s2983_s17 + $0xf0] sm:$0xff]  ;;  %s2321_s23 = sld [smem:[#allocation9 + $0x7]] }
  0x49   : > { %v420_v43 = vadd.f32 %v412_v25, %v393_v33  ;;  %v443_v48 = vmul.f32 %v2311_v35, %v3024_v23  ;;  %v360_v52 = vmul.f32 %v3006_v8, %v351_v36  ;;  %v387_v53 = vmul.f32 %v2291_v40, %v3011_v12  ;;  %v2314_v40 = vld [vmem:[%s2983_s17 + $0xf8] sm:$0xff] }
  0x4a   : > { %v450_v46 = vadd.f32 %v442_v28, %v423_v37  ;;  %v448_v47 = vadd.f32 %v440_v32, %v421_v38  ;;  %v397_v51 = vadd.f32 %v389_v44, %v362_v39  ;;  %v414_v58 = vmul.f32 %v2300_v41, %v3017_v17 }
  0x4b   : > { %v447_v50 = vadd.f32 %v439_v34, %v420_v43  ;;  %v395_v61 = vadd.f32 %v387_v53, %v360_v52  ;;  %v441_v62 = vmul.f32 %v2309_v49, %v3024_v23  ;;  %v364_v10 = vmul.f32 %v3006_v8, %v355_v54 }
  0x4c   : > { %v460_v56 = vadd.f32 %v3043_v42, %v450_v46  ;;  %v458_v57 = vadd.f32 %v3043_v42, %v448_v47  ;;  %v424_v60 = vadd.f32 %v416_v45, %v397_v51  ;;  %v391_v11 = vmul.f32 %v2295_v55, %v3011_v12 }
  0x4d   : > { %v457_v59 = vadd.f32 %v3043_v42, %v447_v50  ;;  %v422_v5 = vadd.f32 %v414_v58, %v395_v61  ;;  %v418_v22 = vmul.f32 %v2304_v1, %v3017_v17  ;;  %v445_v24 = vmul.f32 %v2313_v2, %v3024_v23 }
  0x4e   : > { %vm468_vm1 = vcmp.ge.f32.partialorder %v460_v56, 0.0  ;;  %v476_v63 = vmul.f32 0.2, %v460_v56  ;;  %vm466_vm2 = vcmp.ge.f32.partialorder %v458_v57, 0.0  ;;  %v474_v0 = vmul.f32 0.2, %v458_v57 }
  0x4f   : > { %vm465_vm3 = vcmp.ge.f32.partialorder %v457_v59, 0.0  ;;  %v473_v3 = vmul.f32 0.2, %v457_v59  ;;  %v451_v4 = vadd.f32 %v443_v48, %v424_v60  ;;  %v449_v18 = vadd.f32 %v441_v62, %v422_v5 }
  0x50   : > { %v3061_v7 = vsel %vm468_vm1, %v460_v56, %v476_v63  ;;  %v482_v9 = vsel %vm466_vm2, %v458_v57, %v474_v0  ;;  %v399_v21 = vadd.f32 %v391_v11, %v364_v10  ;;  %v363_v25 = vmul.f32 %v3006_v8, %v354_v6  ;;  %v2530_v63 = vld [vmem:[%s4148_s3] ss:$0 sm:$0xff]  ;;  %v2531_v10 = vld [vmem:[%s4148_s3 + $0x3] ss:$0 sm:$0xff] }
  0x51   : > { %601 = vrot.lane.b32.xlu2 %v3061_v7, %s2828_s12  ;;  %493 = vst.msk [vmem:[%s3071_s19 + $0x18] sm:$0xff] %vm489_vm0, %v3061_v7  ;;  %597 = vrot.lane.b32.xlu1 %v482_v9, %s2828_s12  ;;  %v481_v15 = vsel %vm465_vm3, %v457_v59, %v473_v3  ;;  %v461_v16 = vadd.f32 %v3043_v42, %v451_v4  ;;  %v503_v47 = vstv %s3037_s21 }
  0x52   : > { %491 = vst.msk [vmem:[%s3071_s19 + $0x8] sm:$0xff] %vm489_vm0, %v482_v9  ;;  %595 = vrot.lane.b32.xlu0 %v481_v15, %s2828_s12  ;;  %v459_v28 = vadd.f32 %v3043_v42, %v449_v18  ;;  %v426_v31 = vadd.f32 %v418_v22, %v399_v21  ;;  %v390_v32 = vmul.f32 %v2294_v13, %v3011_v12  ;;  %v507_v55 = vstv %s3084_s24  ;;  %v2533_v18 = vld [vmem:[%s4148_s3 + $0x5] ss:$0 sm:$0xff] }
  0x53   : > { %490 = vst.msk [vmem:[%s3071_s19] sm:$0xff] %vm489_vm0, %v481_v15  ;;  %vm469_vm4 = vcmp.ge.f32.partialorder %v461_v16, 0.0  ;;  %v477_v27 = vmul.f32 0.2, %v461_v16  ;;  %v417_v33 = vmul.f32 %v2303_v14, %v3017_v17  ;;  %v444_v38 = vmul.f32 %v2312_v19, %v3024_v23  ;;  %v2535_v22 = vld [vmem:[%s4148_s3 + $0x8] ss:$0 sm:$0xff] }
  0x54   : > { %vm467_vm5 = vcmp.ge.f32.partialorder %v459_v28, 0.0  ;;  %v475_v35 = vmul.f32 0.2, %v459_v28  ;;  %v453_v36 = vadd.f32 %v445_v24, %v426_v31  ;;  %v398_v37 = vadd.f32 %v390_v32, %v363_v25  ;;  %v2536_v25 = vld [vmem:[%s4148_s3 + $0x7] ss:$0 sm:$0xff] }
  0x55   : > { %v485_v34 = vsel %vm469_vm4, %v461_v16, %v477_v27  ;;  %v365_v39 = vmul.f32 %v3006_v8, %v356_v20  ;;  %v392_v43 = vmul.f32 %v2296_v26, %v3011_v12  ;;  %v419_v44 = vmul.f32 %v2305_v30, %v3017_v17  ;;  %v2534_v20 = vld [vmem:[%s4148_s3 + $0x4] ss:$0 sm:$0xff]  ;;  %v2537_v27 = vld [vmem:[%s4148_s3 + $0xb] ss:$0 sm:$0xff]  ;;  %v2539_v30 = vld [vmem:[%s4148_s3 + $0xe] ss:$0 sm:$0xff] }
  0x56   : > { %494 = vst.msk [vmem:[%s3071_s19 + $0x20] sm:$0xff] %vm489_vm0, %v485_v34  ;;  %v483_v41 = vsel %vm467_vm5, %v459_v28, %v475_v35  ;;  %v463_v45 = vadd.f32 %v3043_v42, %v453_v36  ;;  %v425_v46 = vadd.f32 %v417_v33, %v398_v37  ;;  %v499_v8 = vstv %s3078_s22  ;;  %v2538_v28 = vld [vmem:[%s4148_s3 + $0xa] ss:$0 sm:$0xff]  ;;  %v2540_v31 = vld [vmem:[%s4148_s3 + $0xd] ss:$0 sm:$0xff] }
  0x57   : > { %492 = vst.msk [vmem:[%s3071_s19 + $0x10] sm:$0xff] %vm489_vm0, %v483_v41  ;;  %v400_v12 = vadd.f32 %v392_v43, %v365_v39  ;;  %v446_v17 = vmul.f32 %v2314_v40, %v3024_v23  ;;  %v504_v51 = vmul.f32 %v503_v47, %v482_v9  ;;  %v500_v52 = vmul.f32 %v499_v8, %v481_v15  ;;  %v2541_v32 = vld [vmem:[%s4148_s3 + $0x6] ss:$0 sm:$0xff]  ;;  %v2542_v33 = vld [vmem:[%s4148_s3 + $0x12] ss:$0 sm:$0xff] }
  0x58   : > { %vm471_vm6 = vcmp.ge.f32.partialorder %v463_v45, 0.0  ;;  %v479_v48 = vmul.f32 0.2, %v463_v45  ;;  %v452_v49 = vadd.f32 %v444_v38, %v425_v46  ;;  %v508_v59 = vmul.f32 %v507_v55, %v483_v41  ;;  %v2544_v35 = vld [vmem:[%s4148_s3 + $0x9] ss:$0 sm:$0xff] }
  0x59   : > { %603 = vrot.lane.b32.xlu2 %v485_v34, %s2828_s12  ;;  %599 = vrot.lane.b32.xlu1 %v483_v41, %s2828_s12  ;;  %v427_v50 = vadd.f32 %v419_v44, %v400_v12  ;;  %v505_v58 = vadd.f32 %v504_v51, %v500_v52  ;;  %v511_v61 = vstv %s3108_s1  ;;  %v515_v2 = vstv %s3117_s25  ;;  %s2830_s25 = smov 127  }
  0x5a   : > { %665 = vperm.xlu0 %2527, %v2529_v29   ;;  %v487_v53 = vsel %vm471_vm6, %v463_v45, %v479_v48  ;;  %v462_v54 = vadd.f32 %v3043_v42, %v452_v49  ;;  %v516_v3 = vmul.f32 %v515_v2, %v485_v34  ;;  %v519_v5 = vstv %s2319_s4  ;;  %v2543_v34 = vld [vmem:[%s4148_s3 + $0x11] ss:$0 sm:$0xff]  ;;  %v2545_v36 = vld [vmem:[%s4148_s3 + $0x15] ss:$0 sm:$0xff]  ;;  %v2546_v37 = vld [vmem:[%s4148_s3 + $0x14] ss:$0 sm:$0xff] }
  0x5b   : > { %496 = vst.msk [vmem:[%s3071_s19 + $0x30] sm:$0xff] %vm489_vm0, %v487_v53  ;;  %v454_v56 = vadd.f32 %v446_v17, %v427_v50  ;;  %v509_v1 = vadd.f32 %v508_v59, %v505_v58  ;;  %v523_v11 = vstv %s3120_s8  ;;  %v527_v15 = vstv %s2321_s23  ;;  %v2547_v38 = vld [vmem:[%s4148_s3 + $0xc] ss:$0 sm:$0xff]  ;;  %s2831_s8 = smov 126   ;;  %s2735_s23 = scalar_lea.hbm %s4152_s7, 128 }
  0x5c   : > { %vm470_vm7 = vcmp.ge.f32.partialorder %v462_v54, 0.0  ;;  %v478_v57 = vmul.f32 0.2, %v462_v54  ;;  %v524_v13 = vmul.f32 %v523_v11, %v487_v53  ;;  %v2829_v29 = vmov 0.0   ;;  %v2548_v39 = vld [vmem:[%s4148_s3 + $0x19] ss:$0 sm:$0xff] }
  0x5d   : > { %v464_v23 = vadd.f32 %v3043_v42, %v454_v56  ;;  %v512_v42 = vmul.f32 %v511_v61, %v3061_v7  ;;  %v2532_v7 = vld [vmem:[%s4148_s3 + $0x2] ss:$0 sm:$0xff]  ;;  %577 = vst.msk [vmem:[#allocation2 + $0x30] sm:$0xff] %vm569_vm9, %v2829_v29  ;;  %v2549_v40 = vld [vmem:[%s4148_s3 + $0x17] ss:$0 sm:$0xff] }
  0x5e   : > { %v486_v60 = vsel %vm470_vm7, %v462_v54, %v478_v57  ;;  %578 = vst.msk [vmem:[#allocation2 + $0x38] sm:$0x3] %vm571_vm10, %v2829_v29  ;;  %v2550_v43 = vld [vmem:[%s4148_s3 + $0xf] ss:$0 sm:$0xff]  ;;  %v2552_v44 = vld [vmem:[%s4148_s3 + $0x1c] ss:$0 sm:$0xff] }
  0x5f   : > { %495 = vst.msk [vmem:[%s3071_s19 + $0x28] sm:$0xff] %vm489_vm0, %v486_v60  ;;  %vm472_vm8 = vcmp.ge.f32.partialorder %v464_v23, 0.0  ;;  %v480_v62 = vmul.f32 0.2, %v464_v23  ;;  %v513_v4 = vadd.f32 %v512_v42, %v509_v1  ;;  %v520_v6 = vmul.f32 %v519_v5, %v486_v60  ;;  %v2551_v45 = vld [vmem:[%s4148_s3 + $0x18] ss:$0 sm:$0xff] }
  0x60   : > { %570 = vst.msk [vmem:[#allocation2] sm:$0xff] %vm569_vm9, %v2829_v29  ;;  %v2553_v47 = vld [vmem:[%s4148_s3 + $0x10] ss:$0 sm:$0xff]  ;;  %v2554_v8 = vld [vmem:[%s4148_s3 + $0x1b] ss:$0 sm:$0xff] }
  0x61   : > { %607 = vrot.lane.b32.xlu2 %v487_v53, %s2828_s12  ;;  %605 = vrot.lane.b32.xlu1 %v486_v60, %s2828_s12  ;;  %v488_v0 = vsel %vm472_vm8, %v464_v23, %v480_v62  ;;  %v517_v9 = vadd.f32 %v516_v3, %v513_v4  ;;  %572 = vst.msk [vmem:[#allocation2 + $0x8] sm:$0x3] %vm571_vm10, %v2829_v29  ;;  %v2555_v17 = vld [vmem:[%s4148_s3 + $0x13] ss:$0 sm:$0xff]  ;;  %v2556_v51 = vld [vmem:[%s4148_s3 + $0x16] ss:$0 sm:$0xff] }
  0x62   : > { %497 = vst.msk [vmem:[%s3071_s19 + $0x38] sm:$0xff] %vm489_vm0, %v488_v0  ;;  %v528_v16 = vmul.f32 %v527_v15, %v488_v0  ;;  %v2557_v54 = vld [vmem:[%s4148_s3 + $0x1a] ss:$0 sm:$0xff] }
  0x63   : > { %v521_v14 = vadd.f32 %v520_v6, %v517_v9  ;;  %573 = vst.msk [vmem:[#allocation2 + $0x10] sm:$0xff] %vm569_vm9, %v2829_v29 }
  0x64   : > { %574 = vst.msk [vmem:[#allocation2 + $0x18] sm:$0x3] %vm571_vm10, %v2829_v29 }
  0x65   : > { %v525_v19 = vadd.f32 %v524_v13, %v521_v14  ;;  %575 = vst.msk [vmem:[#allocation2 + $0x20] sm:$0xff] %vm569_vm9, %v2829_v29 }
  0x66   : > { %576 = vst.msk [vmem:[#allocation2 + $0x28] sm:$0x3] %vm571_vm10, %v2829_v29 }
  0x67   : > { %v3153_v21 = vadd.f32 %v528_v16, %v525_v19  ;;  %579 = vst.msk [vmem:[#allocation2 + $0x40] sm:$0xff] %vm569_vm9, %v2829_v29 }
  0x68   : > { %580 = vst.msk [vmem:[#allocation2 + $0x48] sm:$0x3] %vm571_vm10, %v2829_v29 }
  0x69   : > { %661 = vperm.xlu2 %2526, %v2530_v63   ;;  %609 = vrot.lane.b32.xlu1 %v488_v0, %s2828_s12  ;;  %v530_v24 = vmul.f32 %v3153_v21, %v3153_v21  ;;  %581 = vst.msk [vmem:[#allocation2 + $0x50] sm:$0xff] %vm569_vm9, %v2829_v29 }
  0x6a   : > { %582 = vst.msk [vmem:[#allocation2 + $0x58] sm:$0x3] %vm571_vm10, %v2829_v29 }
  0x6b   : > { %v531_v26 = vsel %vm489_vm0, %v530_v24, 0.0  ;;  %583 = vst.msk [vmem:[#allocation2 + $0x60] sm:$0xff] %vm569_vm9, %v2829_v29 }
  0x6c   : > { %584 = vst.msk [vmem:[#allocation2 + $0x68] sm:$0x3] %vm571_vm10, %v2829_v29 }
  0x6d   : > { %585 = vst.msk [vmem:[#allocation2 + $0x70] sm:$0xff] %vm569_vm9, %v2829_v29 }
  0x6e   : > { %586 = vst.msk [vmem:[#allocation2 + $0x78] sm:$0x3] %vm571_vm10, %v2829_v29  ;;  %v2559_v29 = vld [vmem:[%s4148_s3 + $0x21] ss:$0 sm:$0xff] }
  0x71   : > { %673 = vperm.xlu2 %2526, %v2531_v10   ;;  %669 = vperm.xlu1 %2528, %v2532_v7  }
  0x79   : > { %681 = vperm.xlu2 %2526, %v2533_v18   ;;  %677 = vperm.xlu1 %2528, %v2534_v20  }
  0x81   : > { %734 = vperm.xlu2 %2526, %v2535_v22   ;;  %689 = vperm.xlu1 %2528, %v2536_v25   ;;  %v2558_v25 = vld [vmem:[%s4148_s3 + $0x1e] ss:$0 sm:$0xff] }
  0x84   : > { %532 = vadd.xlane.f32.xlu0 %v531_v26 }
  0x89   : > { %746 = vperm.xlu2 %2526, %v2537_v27   ;;  %742 = vperm.xlu1 %2528, %v2538_v28  }
  0x91   : > { %758 = vperm.xlu2 %2526, %v2539_v30   ;;  %754 = vperm.xlu1 %2528, %v2540_v31  }
  0x98   : > { %685 = vperm.xlu0 %2527, %v2541_v32  }
  0x99   : > { %847 = vperm.xlu2 %2526, %v2542_v33   ;;  %843 = vperm.xlu1 %2528, %v2543_v34   ;;  %v2560_v34 = vld [vmem:[%s4148_s3 + $0x24] ss:$0 sm:$0xff] }
  0xa0   : > { %738 = vperm.xlu0 %2527, %v2544_v35  }
  0xa1   : > { %859 = vperm.xlu2 %2526, %v2545_v36   ;;  %855 = vperm.xlu1 %2528, %v2546_v37  }
  0xa8   : > { %750 = vperm.xlu0 %2527, %v2547_v38  }
  0xa9   : > { %956 = vperm.xlu2 %2526, %v2548_v39   ;;  %867 = vperm.xlu1 %2528, %v2549_v40   ;;  %v2561_v39 = vld [vmem:[%s4148_s3 + $0x27] ss:$0 sm:$0xff] }
  0xab   : > { %v602_v41 = vpop.permute.xlu2 %601 }
  0xac   : > { %623 = vst.msk [vmem:[#allocation2 + $0x31] sm:$0xff] %vm619_vm11, %v602_v41 }
  0xb0   : > { %762 = vperm.xlu0 %2527, %v2550_v43  }
  0xb1   : > { %968 = vperm.xlu2 %2526, %v2552_v44   ;;  %952 = vperm.xlu1 %2528, %v2551_v45  }
  0xb3   : > { %v604_v46 = vpop.permute.xlu2 %603  ;;  %v3261_v62 = vld [vmem:[#allocation2 + $0x30] sm:$0xff] }
  0xb4   : > { %624 = vst.msk [vmem:[#allocation2 + $0x41] sm:$0xff] %vm619_vm11, %v604_v46  ;;  %v2562_v46 = vld [vmem:[%s4148_s3 + $0x1d] ss:$0 sm:$0xff] }
  0xb8   : > { %839 = vperm.xlu0 %2527, %v2553_v47  }
  0xb9   : > { %964 = vperm.xlu1 %2528, %v2554_v8  }
  0xbb   : > { %v608_v12 = vpop.permute.xlu2 %607  ;;  %v640_v4 = vld [vmem:[#allocation2 + $0x40] sm:$0xff] }
  0xbc   : > { %626 = vst.msk [vmem:[#allocation2 + $0x61] sm:$0xff] %vm619_vm11, %v608_v12  ;;  %v2563_v12 = vld [vmem:[%s4148_s3 + $0x20] ss:$0 sm:$0xff] }
  0xc0   : > { %851 = vperm.xlu0 %2527, %v2555_v17  }
  0xc3   : > { %v3240_v48 = vpop.permute.xlu2 %661  ;;  %v598_v49 = vpop.permute.xlu1 %597  ;;  %v3267_v3 = vld [vmem:[#allocation2 + $0x60] sm:$0xff] }
  0xc4   : > { %621 = vst.msk [vmem:[#allocation2 + $0x11] sm:$0xff] %vm619_vm11, %v598_v49  ;;  %v596_v50 = vpop.permute.xlu0 %595 }
  0xc5   : > { %620 = vst.msk [vmem:[#allocation2 + $0x1] sm:$0xff] %vm619_vm11, %v596_v50  ;;  %v2564_v50 = vld [vmem:[%s4148_s3 + $0x23] ss:$0 sm:$0xff] }
  0xc8   : > { %863 = vperm.xlu0 %2527, %v2556_v51  }
  0xcb   : > { %v3247_v52 = vpop.permute.xlu2 %673  ;;  %v600_v53 = vpop.permute.xlu1 %599  ;;  %v637_v30 = vld [vmem:[#allocation2 + $0x10] sm:$0xff] }
  0xcc   : > { %622 = vst.msk [vmem:[#allocation2 + $0x21] sm:$0xff] %vm619_vm11, %v600_v53  ;;  %v3254_v23 = vld [vmem:[#allocation2] sm:$0xff]  ;;  %v3276_v16 = vpop.permute.xlu0 %665 }
  0xd0   : > { %960 = vperm.xlu0 %2527, %v2557_v54   ;;  %v2565_v54 = vld [vmem:[%s4148_s3 + $0x26] ss:$0 sm:$0xff] }
  0xd3   : > { %v682_v55 = vpop.permute.xlu2 %681  ;;  %v606_v56 = vpop.permute.xlu1 %605  ;;  %v638_v63 = vld [vmem:[#allocation2 + $0x20] sm:$0xff] }
  0xd4   : > { %625 = vst.msk [vmem:[#allocation2 + $0x51] sm:$0xff] %vm619_vm11, %v606_v56  ;;  %v2566_v56 = vld [vmem:[%s4148_s3 + $0x1f] ss:$0 sm:$0xff] }
  0xdb   : > { %v735_v57 = vpop.permute.xlu2 %734  ;;  %v610_v59 = vpop.permute.xlu1 %609  ;;  %v641_v60 = vld [vmem:[#allocation2 + $0x50] sm:$0xff] }
  0xdc   : > { %v765_v58 = vmul.f32 %v735_v57, %v3254_v23  ;;  %627 = vst.msk [vmem:[#allocation2 + $0x71] sm:$0xff] %vm619_vm11, %v610_v59  ;;  %v3258_v61 = vmul.f32 %v682_v55, %v641_v60  ;;  %v692_v59 = vmul.f32 %v3240_v48, %v3254_v23 }
  0xde   : > { %781 = vrot.lane.b32.xlu1 %v765_v58, %s2830_s25  ;;  %v2567_v58 = vld [vmem:[%s4148_s3 + $0x22] ss:$0 sm:$0xff] }
  0xe3   : > { %v747_v0 = vpop.permute.xlu2 %746  ;;  %v670_v1 = vpop.permute.xlu1 %669  ;;  %v643_v11 = vld [vmem:[#allocation2 + $0x70] sm:$0xff] }
  0xe4   : > { %v768_v42 = vmul.f32 %v747_v0, %v3261_v62  ;;  %v3264_v2 = vmul.f32 %v670_v1, %v638_v63  ;;  %v2568_v0 = vld [vmem:[%s4148_s3 + $0x25] ss:$0 sm:$0xff] }
  0xe6   : > { %787 = vrot.lane.b32.xlu1 %v768_v42, %s2830_s25  ;;  %v695_v42 = vmul.f32 %v3247_v52, %v3261_v62  ;;  %v3337_v52 = vld [vmem:[#allocation2 + $0x21] sm:$0xff] }
  0xeb   : > { %v759_v5 = vpop.permute.xlu2 %758  ;;  %v678_v9 = vpop.permute.xlu1 %677 }
  0xec   : > { %v771_v6 = vmul.f32 %v759_v5, %v3267_v3  ;;  %v3270_v10 = vmul.f32 %v678_v9, %v640_v4 }
  0xee   : > { %793 = vrot.lane.b32.xlu1 %v771_v6, %s2830_s25 }
  0xf3   : > { %v848_v7 = vpop.permute.xlu2 %847  ;;  %v690_v14 = vpop.permute.xlu1 %689 }
  0xf4   : > { %v872_v13 = vmul.f32 %v848_v7, %v638_v63  ;;  %v3273_v15 = vmul.f32 %v690_v14, %v643_v11 }
  0xf6   : > { %890 = vrot.lane.b32.xlu1 %v872_v13, %s2831_s8  ;;  %v693_v13 = vmul.f32 %v3276_v16, %v637_v30 }
  0xf7   : > { %v3280_v24 = vpop.xlane.xlu0 %532 }
  0xfb   : > { %v860_v18 = vpop.permute.xlu2 %859  ;;  %v743_v20 = vpop.permute.xlu1 %742 }
  0xfc   : > { %v875_v19 = vmul.f32 %v860_v18, %v641_v60  ;;  %v767_v22 = vmul.f32 %v743_v20, %v638_v63 }
  0xfe   : > { %896 = vrot.lane.b32.xlu1 %v875_v19, %s2831_s8  ;;  %785 = vrot.lane.b32.xlu0 %v767_v22, %s2830_s25 }
 0x103   : > { %v755_v26 = vpop.permute.xlu1 %754  ;;  %v957_v5 = vpop.permute.xlu2 %956 }
 0x104   : > { %v770_v27 = vmul.f32 %v755_v26, %v641_v60 }
 0x106   : > { %976 = vperm.xlu1 %2528, %v2558_v25   ;;  %791 = vrot.lane.b32.xlu0 %v770_v27, %s2830_s25 }
 0x10a   : > { %v686_v28 = vpop.permute.xlu0 %685 }
 0x10b   : > { %v844_v31 = vpop.permute.xlu1 %843  ;;  %v698_v6 = vmul.f32 %v686_v28, %v3267_v3  ;;  %v3333_v7 = vpop.permute.xlu2 %968 }
 0x10c   : > { %v871_v32 = vmul.f32 %v844_v31, %v637_v30 }
 0x10e   : > { %1029 = vperm.xlu1 %2528, %v2559_v29   ;;  %888 = vrot.lane.b32.xlu0 %v871_v32, %s2831_s8  ;;  %v3344_v32 = vld [vmem:[#allocation2 + $0x11] sm:$0xff] }
 0x112   : > { %v739_v33 = vpop.permute.xlu0 %738 }
 0x113   : > { %v766_v35 = vmul.f32 %v739_v33, %v637_v30  ;;  %v856_v36 = vpop.permute.xlu1 %855 }
 0x114   : > { %v874_v37 = vmul.f32 %v856_v36, %v640_v4  ;;  %v984_v36 = vmul.f32 %v957_v5, %v3344_v32 }
 0x115   : > { %783 = vrot.lane.b32.xlu2 %v766_v35, %s2830_s25 }
 0x116   : > { %1041 = vperm.xlu1 %2528, %v2560_v34   ;;  %894 = vrot.lane.b32.xlu0 %v874_v37, %s2831_s8 }
 0x11a   : > { %v751_v38 = vpop.permute.xlu0 %750 }
 0x11b   : > { %v769_v40 = vmul.f32 %v751_v38, %v640_v4  ;;  %v868_v41 = vpop.permute.xlu1 %867  ;;  %v3352_v38 = vld [vmem:[#allocation2 + $0x1] sm:$0xff] }
 0x11c   : > { %v877_v43 = vmul.f32 %v868_v41, %v643_v11 }
 0x11d   : > { %789 = vrot.lane.b32.xlu2 %v769_v40, %s2830_s25 }
 0x11e   : > { %1053 = vperm.xlu1 %2528, %v2561_v39   ;;  %900 = vrot.lane.b32.xlu0 %v877_v43, %s2831_s8  ;;  %v3354_v39 = vld [vmem:[#allocation2 + $0x41] sm:$0xff] }
 0x122   : > { %v763_v44 = vpop.permute.xlu0 %762 }
 0x123   : > { %v772_v45 = vmul.f32 %v763_v44, %v643_v11  ;;  %v953_v55 = vpop.permute.xlu1 %952 }
 0x124   : > { %v983_v40 = vmul.f32 %v953_v55, %v3352_v38 }
 0x125   : > { %795 = vrot.lane.b32.xlu2 %v772_v45, %s2830_s25 }
 0x126   : > { %972 = vperm.xlu0 %2527, %v2562_v46  }
 0x12a   : > { %v840_v47 = vpop.permute.xlu0 %839 }
 0x12b   : > { %v870_v8 = vmul.f32 %v840_v47, %v3254_v23  ;;  %v965_v57 = vpop.permute.xlu1 %964  ;;  %v3361_v47 = vld [vmem:[#allocation2 + $0x31] sm:$0xff] }
 0x12d   : > { %886 = vrot.lane.b32.xlu2 %v870_v8, %s2831_s8 }
 0x12e   : > { %1025 = vperm.xlu0 %2527, %v2563_v12   ;;  %v986_v12 = vmul.f32 %v965_v57, %v3361_v47 }
 0x132   : > { %v852_v17 = vpop.permute.xlu0 %851 }
 0x133   : > { %v873_v49 = vmul.f32 %v852_v17, %v3261_v62 }
 0x135   : > { %892 = vrot.lane.b32.xlu2 %v873_v49, %s2831_s8  ;;  %v3364_v49 = vld [vmem:[#allocation2 + $0x71] sm:$0xff] }
 0x136   : > { %1037 = vperm.xlu0 %2527, %v2564_v50  }
 0x13a   : > { %v864_v51 = vpop.permute.xlu0 %863 }
 0x13b   : > { %v876_v53 = vmul.f32 %v864_v51, %v3267_v3 }
 0x13d   : > { %898 = vrot.lane.b32.xlu2 %v876_v53, %s2831_s8 }
 0x13e   : > { %1049 = vperm.xlu0 %2527, %v2565_v54  }
 0x142   : > { %v961_v23 = vpop.permute.xlu0 %960 }
 0x143   : > { %v985_v62 = vmul.f32 %v961_v23, %v3337_v52 }
 0x145   : > { %980 = vperm.xlu2 %2526, %v2566_v56   ;;  %v3368_v56 = vld [vmem:[#allocation2 + $0x61] sm:$0xff] }
 0x14d   : > { %1033 = vperm.xlu2 %2526, %v2567_v58  }
 0x150   : > { %v782_v60 = vpop.permute.xlu1 %781 }
 0x151   : > { %v805_v63 = vadd.f32 %v782_v60, %v692_v59  ;;  %v2569_v59 = vld [vmem:[%s4148_s3 + $0x2a] ss:$0 sm:$0xff] }
 0x155   : > { %1045 = vperm.xlu2 %2526, %v2568_v0  }
 0x158   : > { %v788_v1 = vpop.permute.xlu1 %787 }
 0x159   : > { %v808_v4 = vadd.f32 %v788_v1, %v695_v42 }
 0x160   : > { %v794_v9 = vpop.permute.xlu1 %793 }
 0x161   : > { %v811_v11 = vadd.f32 %v794_v9, %v698_v6  ;;  %v2570_v6 = vld [vmem:[%s4148_s3 + $0x2d] ss:$0 sm:$0xff] }
 0x168   : > { %v891_v48 = vpop.permute.xlu1 %890 }
 0x16f   : > { %v784_v14 = vpop.permute.xlu2 %783 }
 0x170   : > { %v806_v18 = vadd.f32 %v784_v14, %v693_v13  ;;  %v897_v19 = vpop.permute.xlu1 %896  ;;  %v786_v20 = vpop.permute.xlu0 %785 }
 0x171   : > { %v807_v22 = vadd.f32 %v786_v20, %v3264_v2 }
 0x173   : > { %v912_v25 = vadd.f32 %v891_v48, %v807_v22 }
 0x175   : > { %v3340_v3 = vadd.f32 %v985_v62, %v912_v25 }
 0x177   : > { %v790_v26 = vpop.permute.xlu2 %789 }
 0x178   : > { %v809_v27 = vadd.f32 %v790_v26, %v3270_v10  ;;  %v977_v28 = vpop.permute.xlu1 %976  ;;  %v792_v29 = vpop.permute.xlu0 %791  ;;  %v2571_v26 = vld [vmem:[%s4148_s3 + $0x28] ss:$0 sm:$0xff] }
 0x179   : > { %v810_v16 = vadd.f32 %v792_v29, %v3258_v61  ;;  %v989_v57 = vmul.f32 %v977_v28, %v3368_v56  ;;  %v2573_v28 = vld [vmem:[%s4148_s3 + $0x2b] ss:$0 sm:$0xff]  ;;  %v2574_v29 = vld [vmem:[%s4148_s3 + $0x2c] ss:$0 sm:$0xff] }
 0x17b   : > { %v915_v30 = vadd.f32 %v897_v19, %v810_v16  ;;  %v2575_v16 = vld [vmem:[%s4148_s3 + $0x2e] ss:$0 sm:$0xff] }
 0x17f   : > { %v796_v31 = vpop.permute.xlu2 %795 }
 0x180   : > { %v812_v2 = vadd.f32 %v796_v31, %v3273_v15  ;;  %v1030_v33 = vpop.permute.xlu1 %1029  ;;  %v889_v35 = vpop.permute.xlu0 %888 }
 0x181   : > { %v1057_v34 = vmul.f32 %v1030_v33, %v3344_v32  ;;  %v911_v37 = vadd.f32 %v889_v35, %v806_v18  ;;  %v987_v33 = vmul.f32 %v3333_v7, %v3354_v39 }
 0x183   : > { %1074 = vrot.lane.b32.xlu0 %v1057_v34, %s2830_s25  ;;  %v3350_v10 = vadd.f32 %v984_v36, %v911_v37 }
 0x187   : > { %v887_v61 = vpop.permute.xlu2 %886 }
 0x188   : > { %v910_v41 = vadd.f32 %v887_v61, %v805_v63  ;;  %v1042_v15 = vpop.permute.xlu1 %1041  ;;  %v895_v44 = vpop.permute.xlu0 %894  ;;  %v932_v63 = vld [vmem:[#allocation2 + $0x51] sm:$0xff] }
 0x189   : > { %v1060_v43 = vmul.f32 %v1042_v15, %v3354_v39  ;;  %v914_v45 = vadd.f32 %v895_v44, %v809_v27  ;;  %v2572_v27 = vld [vmem:[%s4148_s3 + $0x29] ss:$0 sm:$0xff] }
 0x18a   : > { %v3358_v46 = vadd.f32 %v983_v40, %v910_v41 }
 0x18b   : > { %1080 = vrot.lane.b32.xlu0 %v1060_v43, %s2830_s25  ;;  %v995_v34 = vadd.f32 %v987_v33, %v914_v45  ;;  %v1218_v33 = vld [vmem:[#allocation2 + $0x2] sm:$0xff] }
 0x18f   : > { %v893_v8 = vpop.permute.xlu2 %892 }
 0x190   : > { %v913_v17 = vadd.f32 %v893_v8, %v808_v4  ;;  %v1054_v50 = vpop.permute.xlu1 %1053  ;;  %v901_v53 = vpop.permute.xlu0 %900 }
 0x191   : > { %v1063_v51 = vmul.f32 %v1054_v50, %v3364_v49  ;;  %v917_v54 = vadd.f32 %v901_v53, %v812_v2 }
 0x192   : > { %v994_v55 = vadd.f32 %v986_v12, %v913_v17 }
 0x193   : > { %1086 = vrot.lane.b32.xlu0 %v1063_v51, %s2830_s25  ;;  %v2577_v51 = vld [vmem:[%s4148_s3 + $0x30] ss:$0 sm:$0xff] }
 0x197   : > { %v899_v58 = vpop.permute.xlu2 %898 }
 0x198   : > { %v916_v60 = vadd.f32 %v899_v58, %v811_v11  ;;  %v973_v0 = vpop.permute.xlu0 %972 }
 0x199   : > { %v988_v42 = vmul.f32 %v973_v0, %v932_v63 }
 0x19a   : > { %v997_v1 = vadd.f32 %v989_v57, %v916_v60 }
 0x19b   : > { %1138 = vperm.xlu0 %2527, %v2569_v59   ;;  %v3374_v4 = vadd.f32 %v988_v42, %v915_v30  ;;  %v2576_v30 = vld [vmem:[%s4148_s3 + $0x2f] ss:$0 sm:$0xff] }
 0x19f   : > { %v981_v5 = vpop.permute.xlu2 %980 }
 0x1a0   : > { %v990_v9 = vmul.f32 %v981_v5, %v3364_v49  ;;  %v1026_v48 = vpop.permute.xlu0 %1025 }
 0x1a1   : > { %v1056_v23 = vmul.f32 %v1026_v48, %v3352_v38  ;;  %v2588_v48 = vld [vmem:[%s4148_s3 + $0x39] ss:$0 sm:$0xff] }
 0x1a2   : > { %v998_v13 = vadd.f32 %v990_v9, %v917_v54  ;;  %v2587_v9 = vld [vmem:[%s4148_s3 + $0x44] ss:$0 sm:$0xff] }
 0x1a3   : > { %1150 = vperm.xlu0 %2527, %v2570_v6   ;;  %1072 = vrot.lane.b32.xlu2 %v1056_v23, %s2830_s25  ;;  %v2583_v6 = vld [vmem:[%s4148_s3 + $0x3d] ss:$0 sm:$0xff]  ;;  %v2590_v23 = vld [vmem:[%s4148_s3 + $0x47] ss:$0 sm:$0xff] }
 0x1a7   : > { %v1034_v11 = vpop.permute.xlu2 %1033 }
 0x1a8   : > { %v1058_v14 = vmul.f32 %v1034_v11, %v3337_v52  ;;  %v1038_v18 = vpop.permute.xlu0 %1037  ;;  %v2591_v11 = vld [vmem:[%s4148_s3 + $0x3c] ss:$0 sm:$0xff] }
 0x1a9   : > { %v1059_v19 = vmul.f32 %v1038_v18, %v3361_v47  ;;  %v2592_v18 = vld [vmem:[%s4148_s3 + $0x46] ss:$0 sm:$0xff] }
 0x1aa   : > { %1076 = vrot.lane.b32.xlu1 %v1058_v14, %s2830_s25  ;;  %v2593_v14 = vld [vmem:[%s4148_s3 + $0x35] ss:$0 sm:$0xff] }
 0x1ab   : > { %1078 = vrot.lane.b32.xlu2 %v1059_v19, %s2830_s25  ;;  %v2594_v19 = vld [vmem:[%s4148_s3 + $0x3f] ss:$0 sm:$0xff] }
 0x1af   : > { %v1046_v20 = vpop.permute.xlu2 %1045 }
 0x1b0   : > { %v1061_v22 = vmul.f32 %v1046_v20, %v932_v63  ;;  %v1050_v62 = vpop.permute.xlu0 %1049  ;;  %v2595_v20 = vld [vmem:[%s4148_s3 + $0x34] ss:$0 sm:$0xff] }
 0x1b1   : > { %v1062_v25 = vmul.f32 %v1050_v62, %v3368_v56  ;;  %v2597_v62 = vld [vmem:[%s4148_s3 + $0x37] ss:$0 sm:$0xff] }
 0x1b2   : > { %1082 = vrot.lane.b32.xlu1 %v1061_v22, %s2830_s25  ;;  %v2596_v22 = vld [vmem:[%s4148_s3 + $0x42] ss:$0 sm:$0xff] }
 0x1b3   : > { %1084 = vrot.lane.b32.xlu2 %v1062_v25, %s2830_s25 }
 0x1ba   : > { %1130 = vperm.xlu1 %2528, %v2571_v26  }
 0x1bb   : > { %1134 = vperm.xlu2 %2526, %v2572_v27   ;;  %v2598_v27 = vld [vmem:[%s4148_s3 + $0x45] ss:$0 sm:$0xff] }
 0x1c2   : > { %1142 = vperm.xlu1 %2528, %v2573_v28  }
 0x1c3   : > { %1146 = vperm.xlu2 %2526, %v2574_v29  }
 0x1ca   : > { %1154 = vperm.xlu1 %2528, %v2575_v16   ;;  %v2599_v16 = vld [vmem:[%s4148_s3 + $0x33] ss:$0 sm:$0xff] }
 0x1cb   : > { %1158 = vperm.xlu2 %2526, %v2576_v30  }
 0x1f5   : > { %v1075_v31 = vpop.permute.xlu0 %1074 }
 0x1f6   : > { %v3408_v2 = vadd.f32 %v1075_v31, %v3350_v10  ;;  %v2600_v31 = vld [vmem:[%s4148_s3 + $0x36] ss:$0 sm:$0xff] }
 0x1fd   : > { %v1081_v35 = vpop.permute.xlu0 %1080  ;;  %v1073_v36 = vpop.permute.xlu2 %1072 }
 0x1fe   : > { %v3412_v37 = vadd.f32 %v1081_v35, %v995_v34  ;;  %v3415_v61 = vadd.f32 %v1073_v36, %v3358_v46  ;;  %v3513_v36 = vld [vmem:[#allocation2 + $0x32] sm:$0xff] }
 0x205   : > { %v1087_v40 = vpop.permute.xlu0 %1086  ;;  %v1079_v41 = vpop.permute.xlu2 %1078 }
 0x206   : > { %v3417_v15 = vadd.f32 %v1087_v40, %v998_v13  ;;  %v3419_v43 = vadd.f32 %v1079_v41, %v994_v55  ;;  %v2589_v13 = vld [vmem:[%s4148_s3 + $0x43] ss:$0 sm:$0xff] }
 0x20d   : > { %v1139_v44 = vpop.permute.xlu0 %1138  ;;  %v1085_v10 = vpop.permute.xlu2 %1084 }
 0x20e   : > { %v1163_v8 = vmul.f32 %v1139_v44, %v3337_v52  ;;  %v3422_v12 = vadd.f32 %v1085_v10, %v997_v1  ;;  %v2581_v1 = vld [vmem:[%s4148_s3 + $0x3a] ss:$0 sm:$0xff] }
 0x210   : > { %1181 = vrot.lane.b32.xlu2 %v1163_v8, %s2831_s8  ;;  %v3518_v8 = vld [vmem:[#allocation2 + $0x62] sm:$0xff] }
 0x215   : > { %v1151_v7 = vpop.permute.xlu0 %1150  ;;  %v1135_v45 = vpop.permute.xlu2 %1134 }
 0x216   : > { %v1166_v17 = vmul.f32 %v1151_v7, %v932_v63  ;;  %v1162_v46 = vmul.f32 %v1135_v45, %v3344_v32  ;;  %v2578_v32 = vld [vmem:[%s4148_s3 + $0x38] ss:$0 sm:$0xff]  ;;  %v2579_v63 = vld [vmem:[%s4148_s3 + $0x32] ss:$0 sm:$0xff] }
 0x218   : > { %1187 = vrot.lane.b32.xlu2 %v1166_v17, %s2831_s8  ;;  %1179 = vrot.lane.b32.xlu1 %v1162_v46, %s2831_s8 }
 0x21c   : > { %v1077_v50 = vpop.permute.xlu1 %1076 }
 0x21d   : > { %v1098_v52 = vadd.f32 %v1077_v50, %v3340_v3  ;;  %v1147_v53 = vpop.permute.xlu2 %1146  ;;  %v1219_v50 = vld [vmem:[#allocation2 + $0x12] sm:$0xff] }
 0x21e   : > { %v1165_v54 = vmul.f32 %v1147_v53, %v3354_v39  ;;  %v2580_v39 = vld [vmem:[%s4148_s3 + $0x3b] ss:$0 sm:$0xff] }
 0x220   : > { %1243 = vperm.xlu2 %2526, %v2577_v51   ;;  %1185 = vrot.lane.b32.xlu1 %v1165_v54, %s2831_s8 }
 0x224   : > { %v1083_v55 = vpop.permute.xlu1 %1082 }
 0x225   : > { %v1101_v58 = vadd.f32 %v1083_v55, %v3374_v4  ;;  %v1159_v59 = vpop.permute.xlu2 %1158  ;;  %v2584_v4 = vld [vmem:[%s4148_s3 + $0x41] ss:$0 sm:$0xff] }
 0x226   : > { %v1168_v57 = vmul.f32 %v1159_v59, %v3364_v49  ;;  %v2582_v49 = vld [vmem:[%s4148_s3 + $0x3e] ss:$0 sm:$0xff] }
 0x228   : > { %1316 = vperm.xlu2 %2526, %v2578_v32   ;;  %1191 = vrot.lane.b32.xlu1 %v1168_v57, %s2831_s8  ;;  %v1220_v57 = vld [vmem:[#allocation2 + $0x22] sm:$0xff] }
 0x22c   : > { %v1131_v3 = vpop.permute.xlu1 %1130 }
 0x22d   : > { %v1161_v60 = vmul.f32 %v1131_v3, %v3352_v38 }
 0x22f   : > { %1177 = vrot.lane.b32.xlu0 %v1161_v60, %s2831_s8 }
 0x230   : > { %1328 = vperm.xlu2 %2526, %v2580_v39   ;;  %1251 = vperm.xlu1 %2528, %v2579_v63  }
 0x234   : > { %v1143_v0 = vpop.permute.xlu1 %1142 }
 0x235   : > { %v1164_v42 = vmul.f32 %v1143_v0, %v3361_v47  ;;  %v2585_v47 = vld [vmem:[%s4148_s3 + $0x31] ss:$0 sm:$0xff] }
 0x237   : > { %1183 = vrot.lane.b32.xlu0 %v1164_v42, %s2831_s8 }
 0x238   : > { %1340 = vperm.xlu2 %2526, %v2582_v49   ;;  %1324 = vperm.xlu1 %2528, %v2581_v1   ;;  %v1225_v49 = vld [vmem:[#allocation2 + $0x72] sm:$0xff] }
 0x23c   : > { %v1155_v38 = vpop.permute.xlu1 %1154 }
 0x23d   : > { %v1167_v5 = vmul.f32 %v1155_v38, %v3368_v56  ;;  %v2586_v56 = vld [vmem:[%s4148_s3 + $0x40] ss:$0 sm:$0xff] }
 0x23f   : > { %1189 = vrot.lane.b32.xlu0 %v1167_v5, %s2831_s8 }
 0x240   : > { %1425 = vperm.xlu2 %2526, %v2584_v4   ;;  %1336 = vperm.xlu1 %2528, %v2583_v6   ;;  %v1223_v6 = vld [vmem:[#allocation2 + $0x52] sm:$0xff] }
 0x247   : > { %1247 = vperm.xlu0 %2527, %v2585_v47  }
 0x248   : > { %1437 = vperm.xlu2 %2526, %v2587_v9   ;;  %1421 = vperm.xlu1 %2528, %v2586_v56  }
 0x24f   : > { %1320 = vperm.xlu0 %2527, %v2588_v48  }
 0x250   : > { %1449 = vperm.xlu2 %2526, %v2590_v23   ;;  %1433 = vperm.xlu1 %2528, %v2589_v13  }
 0x257   : > { %1332 = vperm.xlu0 %2527, %v2591_v11  }
 0x258   : > { %1263 = vperm.xlu2 %2526, %v2593_v14   ;;  %1445 = vperm.xlu1 %2528, %v2592_v18  }
 0x25f   : > { %1344 = vperm.xlu0 %2527, %v2594_v19  }
 0x260   : > { %1259 = vperm.xlu1 %2528, %v2595_v20  }
 0x267   : > { %1429 = vperm.xlu0 %2527, %v2596_v22  }
 0x268   : > { %1271 = vperm.xlu1 %2528, %v2597_v62  }
 0x26a   : > { %v1182_v25 = vpop.permute.xlu2 %1181 }
 0x26b   : > { %v1203_v26 = vadd.f32 %v1182_v25, %v1098_v52 }
 0x26f   : > { %1441 = vperm.xlu0 %2527, %v2598_v27  }
 0x272   : > { %v1188_v28 = vpop.permute.xlu2 %1187 }
 0x273   : > { %v1206_v29 = vadd.f32 %v1188_v28, %v1101_v58  ;;  %v1222_v58 = vld [vmem:[#allocation2 + $0x42] sm:$0xff]  ;;  %v534_v28 = vrot.slane %v3280_v24, 4 }
 0x277   : > { %1255 = vperm.xlu0 %2527, %v2599_v16  }
 0x27a   : > { %v1244_v30 = vpop.permute.xlu2 %1243 }
 0x27b   : > { %v1274_v55 = vmul.f32 %v1244_v30, %v1218_v33  ;;  %v535_v30 = vadd.f32 %v534_v28, %v3280_v24 }
 0x27f   : > { %1267 = vperm.xlu0 %2527, %v2600_v31  }
 0x282   : > { %v1317_v34 = vpop.permute.xlu2 %1316 }
 0x283   : > { %v1347_v35 = vmul.f32 %v1317_v34, %v1218_v33 }
 0x285   : > { %1363 = vrot.lane.b32.xlu2 %v1347_v35, %s2830_s25  ;;  %v536_v35 = vrot.slane %v535_v30, 2 }
 0x28a   : > { %v1329_v40 = vpop.permute.xlu2 %1328  ;;  %v1180_v41 = vpop.permute.xlu1 %1179 }
 0x28b   : > { %v1350_v44 = vmul.f32 %v1329_v40, %v3513_v36  ;;  %v1202_v10 = vadd.f32 %v1180_v41, %v3408_v2 }
 0x28d   : > { %1369 = vrot.lane.b32.xlu2 %v1350_v44, %s2830_s25  ;;  %v537_v44 = vadd.f32 %v536_v35, %v535_v30 }
 0x292   : > { %v1341_v7 = vpop.permute.xlu2 %1340  ;;  %v1186_v45 = vpop.permute.xlu1 %1185 }
 0x293   : > { %v1353_v17 = vmul.f32 %v1341_v7, %v3518_v8  ;;  %v3522_v46 = vadd.f32 %v1186_v45, %v3412_v37 }
 0x295   : > { %1375 = vrot.lane.b32.xlu2 %v1353_v17, %s2830_s25  ;;  %v538_v17 = vrot.slane %v537_v44, 1 }
 0x29a   : > { %v1426_v51 = vpop.permute.xlu2 %1425  ;;  %v1192_v52 = vpop.permute.xlu1 %1191 }
 0x29b   : > { %v1453_v53 = vmul.f32 %v1426_v51, %v1219_v50  ;;  %v3526_v54 = vadd.f32 %v1192_v52, %v3417_v15  ;;  %v539_v51 = vadd.f32 %v538_v17, %v537_v44 }
 0x29d   : > { %1470 = vrot.lane.b32.xlu2 %v1453_v53, %s2831_s8  ;;  %2601 = vrsqrt.f32 %v539_v51  ;;  %vm547_vm12 = vcmp.eq.f32.partialorder %v539_v51, inf  ;;  %vm549_vm13 = vcmp.eq.f32.partialorder %v539_v51, 0.0 }
 0x2a1   : > { %v1178_v2 = vpop.permute.xlu0 %1177 }
 0x2a2   : > { %v1201_v32 = vadd.f32 %v1178_v2, %v3415_v61  ;;  %v1438_v59 = vpop.permute.xlu2 %1437  ;;  %v1252_v37 = vpop.permute.xlu1 %1251 }
 0x2a3   : > { %v1456_v3 = vmul.f32 %v1438_v59, %v1222_v58  ;;  %v1276_v39 = vmul.f32 %v1252_v37, %v1220_v57 }
 0x2a4   : > { %v3530_v60 = vadd.f32 %v1274_v55, %v1201_v32 }
 0x2a5   : > { %1476 = vrot.lane.b32.xlu2 %v1456_v3, %s2831_s8  ;;  %v3533_v63 = vadd.f32 %v1276_v39, %v1203_v26 }
 0x2a9   : > { %v1184_v15 = vpop.permute.xlu0 %1183 }
 0x2aa   : > { %v3536_v0 = vadd.f32 %v1184_v15, %v3419_v43  ;;  %v1450_v42 = vpop.permute.xlu2 %1449  ;;  %v1325_v1 = vpop.permute.xlu1 %1324 }
 0x2ab   : > { %v1459_v61 = vmul.f32 %v1450_v42, %v1225_v49  ;;  %v1349_v38 = vmul.f32 %v1325_v1, %v1220_v57 }
 0x2ad   : > { %1482 = vrot.lane.b32.xlu2 %v1459_v61, %s2831_s8  ;;  %1367 = vrot.lane.b32.xlu1 %v1349_v38, %s2830_s25 }
 0x2b1   : > { %v1190_v4 = vpop.permute.xlu0 %1189 }
 0x2b2   : > { %v3541_v5 = vadd.f32 %v1190_v4, %v3422_v12  ;;  %v1264_v47 = vpop.permute.xlu2 %1263  ;;  %v1337_v9 = vpop.permute.xlu1 %1336 }
 0x2b3   : > { %v1279_v56 = vmul.f32 %v1264_v47, %v1223_v6  ;;  %v1352_v48 = vmul.f32 %v1337_v9, %v1223_v6 }
 0x2b5   : > { %v3543_v43 = vadd.f32 %v1279_v56, %v1206_v29  ;;  %1373 = vrot.lane.b32.xlu1 %v1352_v48, %s2830_s25 }
 0x2b9   : > { %v1248_v23 = vpop.permute.xlu0 %1247 }
 0x2ba   : > { %v1275_v13 = vmul.f32 %v1248_v23, %v1219_v50  ;;  %v1422_v11 = vpop.permute.xlu1 %1421 }
 0x2bb   : > { %v1452_v14 = vmul.f32 %v1422_v11, %v1218_v33 }
 0x2bc   : > { %v3546_v18 = vadd.f32 %v1275_v13, %v1202_v10 }
 0x2bd   : > { %1468 = vrot.lane.b32.xlu1 %v1452_v14, %s2831_s8 }
 0x2c1   : > { %v1321_v19 = vpop.permute.xlu0 %1320 }
 0x2c2   : > { %v1348_v12 = vmul.f32 %v1321_v19, %v1219_v50  ;;  %v1434_v20 = vpop.permute.xlu1 %1433 }
 0x2c3   : > { %v1455_v22 = vmul.f32 %v1434_v20, %v3513_v36 }
 0x2c4   : > { %1365 = vrot.lane.b32.xlu0 %v1348_v12, %s2830_s25 }
 0x2c5   : > { %1474 = vrot.lane.b32.xlu1 %v1455_v22, %s2831_s8 }
 0x2c9   : > { %v1333_v62 = vpop.permute.xlu0 %1332 }
 0x2ca   : > { %v1351_v25 = vmul.f32 %v1333_v62, %v1222_v58  ;;  %v1446_v26 = vpop.permute.xlu1 %1445 }
 0x2cb   : > { %v1458_v27 = vmul.f32 %v1446_v26, %v3518_v8 }
 0x2cc   : > { %1371 = vrot.lane.b32.xlu0 %v1351_v25, %s2830_s25 }
 0x2cd   : > { %1480 = vrot.lane.b32.xlu1 %v1458_v27, %s2831_s8 }
 0x2d1   : > { %v1345_v29 = vpop.permute.xlu0 %1344 }
 0x2d2   : > { %v1354_v16 = vmul.f32 %v1345_v29, %v1225_v49  ;;  %v1260_v31 = vpop.permute.xlu1 %1259 }
 0x2d3   : > { %v1278_v33 = vmul.f32 %v1260_v31, %v1222_v58 }
 0x2d4   : > { %1377 = vrot.lane.b32.xlu0 %v1354_v16, %s2830_s25  ;;  %s2444_s25 = sshll.u32 %s2898_s2, 6 }
 0x2d5   : > { %v3559_v34 = vadd.f32 %v1278_v33, %v3522_v46  ;;  %v2602_v46 = vpop.eup %2601  ;;  %s2117_s12 = scalar_lea.hbm %s4152_s7, %s2444_s25 }
 0x2d6   : > { %v541_v52 = vmul.f32 %v2602_v46, %v539_v51 }
 0x2d8   : > { %v542_v53 = vmul.f32 %v2602_v46, %v541_v52 }
 0x2d9   : > { %v1430_v40 = vpop.permute.xlu0 %1429 }
 0x2da   : > { %v1454_v41 = vmul.f32 %v1430_v40, %v1220_v57  ;;  %v1272_v10 = vpop.permute.xlu1 %1271  ;;  %v543_v2 = vmul.f32 0.5, %v542_v53  ;;  %v550_v57 = vand.u32 2147483648, %v539_v51 }
 0x2db   : > { %v1281_v7 = vmul.f32 %v1272_v10, %v1225_v49 }
 0x2dc   : > { %1472 = vrot.lane.b32.xlu0 %v1454_v41, %s2831_s8  ;;  %v544_v55 = vsub.f32 1.5, %v543_v2 }
 0x2dd   : > { %v3563_v45 = vadd.f32 %v1281_v7, %v3526_v54 }
 0x2de   : > { %v545_v32 = vmul.f32 %v2602_v46, %v544_v55 }
 0x2df   : > { %v1364_v3 = vpop.permute.xlu2 %1363 }
 0x2e0   : > { %v546_v58 = vmul.f32 %v545_v32, %v539_v51  ;;  %v1387_v14 = vadd.f32 %v1364_v3, %v3530_v60 }
 0x2e1   : > { %v1442_v24 = vpop.permute.xlu0 %1441 }
 0x2e2   : > { %v1457_v50 = vmul.f32 %v1442_v24, %v1223_v6  ;;  %v548_v59 = vsel %vm547_vm12, %v539_v51, %v546_v58 }
 0x2e3   : > { %v551_v54 = vsel %vm549_vm13, %v550_v57, %v548_v59 }
 0x2e4   : > { %1478 = vrot.lane.b32.xlu0 %v1457_v50, %s2831_s8  ;;  %v552_v37 = vmax.f32 %v551_v54, 1e-12  ;;  %s2118_s8 = sshll.u32 %s3071_s19, 4  ;;  %s2120_s19 = sshll.u32 %s2117_s12, 4  ;;  %s3787_s8 = int_to_ptr.vmem [resolvable:$true] %s2118_s8  ;;  %s2121_s19 = int_to_ptr.hbm [resolvable:$true] %s2120_s19 }
 0x2e5   : > { %s2729_s1 = sshra.s32 %s2121_s19, 4  ;;  %s2730_s1 = int_to_ptr.hbm [resolvable:$true] %s2729_s1 }
 0x2e6   : > { %2603 = vrcp.f32 %v552_v37  ;;  %v564_v47 = vand.u32 2147483648, %v552_v37  ;;  %vm558_vm15 = vweird.f32 %v552_v37  ;;  %v562_v9 = vand.u32 2147483647, %v552_v37  ;;  %s2731_s4 = scalar_lea.hbm %s2730_s1, 64  ;;  %p2736_p0 = scmp.lt.s32.totalorder %s2730_s1, %s4152_s7 }
 0x2e7   : > { %v1370_v42 = vpop.permute.xlu2 %1369  ;;  %p2732_p4 = scmp.ne.s32.totalorder %s2730_s1, %s2731_s4  ;;  %p2737_p7 = scmp.lt.s32.totalorder %s2735_s23, %s2731_s4 }
 0x2e8   : > { %v565_v23 = vor.u32 1.1754944e-38, %v564_v47  ;;  %vm563_vm2 = vcmp.eq.f32.partialorder %v562_v9, 8.507059e+37 }
 0x2e9   : > { %v1256_v38 = vpop.permute.xlu0 %1255  ;;  %p2733_p6 = pnand %p2732_p4, %p2929_p11  ;;  %p2738_p5 = por %p2737_p7, %p2736_p0 }
 0x2ea   : > { %v1277_v19 = vmul.f32 %v1256_v38, %v3513_v36 }
 0x2eb   : > { %p2734_p13 = pneg %p2733_p6 }
 0x2ec   : > { %v2604_v39 = vpop.eup %2603  ;;  %v1285_v62 = vadd.f32 %v1277_v19, %v3536_v0 }
 0x2ed   : > { %v554_v15 = vmul.f32 %v2604_v39, %v552_v37  ;;  %vm559_vm14 = vweird.f32 %v2604_v39  ;;  %p2739_p8 = pnand %p2738_p5, %p2734_p13 }
 0x2ee   : > { %vm560_vm1 = vmor %vm558_vm15, %vm559_vm14  ;;  %v1390_v60 = vadd.f32 %v1370_v42, %v1285_v62 }
 0x2ef   : > { %v555_v49 = vsub.f32 1.0, %v554_v15  ;;  %v1376_v56 = vpop.permute.xlu2 %1375 }
 0x2f1   : > { %v556_v61 = vmul.f32 %v2604_v39, %v555_v49  ;;  %v1268_v13 = vpop.permute.xlu0 %1267 }
 0x2f2   : > { %v1280_v29 = vmul.f32 %v1268_v13, %v3518_v8 }
 0x2f3   : > { %v557_v4 = vadd.f32 %v2604_v39, %v556_v61 }
 0x2f4   : > { %v1288_v35 = vadd.f32 %v1280_v29, %v3541_v5 }
 0x2f5   : > { %v561_v48 = vsel %vm560_vm1, %v2604_v39, %v557_v4 }
 0x2f6   : > { %v566_v11 = vsel %vm563_vm2, %v565_v23, %v561_v48  ;;  %v1393_v17 = vadd.f32 %v1376_v56, %v1288_v35 }
 0x2f7   : > { %v568_v22 = vmul.f32 %v566_v11, %v3153_v21  ;;  %v1471_v27 = vpop.permute.xlu2 %1470 }
 0x2ff   : > { %v1477_v7 = vpop.permute.xlu2 %1476 }
 0x307   : > { %v1483_v32 = vpop.permute.xlu2 %1482 }
 0x31f   : > { %v1368_v1 = vpop.permute.xlu1 %1367 }
 0x320   : > { %v1389_v57 = vadd.f32 %v1368_v1, %v3533_v63 }
 0x327   : > { %v3566_v6 = vpop.permute.xlu1 %1373 }
 0x328   : > { %v1392_v49 = vadd.f32 %v3566_v6, %v3543_v43 }
 0x32f   : > { %v1469_v12 = vpop.permute.xlu1 %1468 }
 0x330   : > { %v1492_v20 = vadd.f32 %v1469_v12, %v1387_v14 }
 0x332   : > { %v1500_v25 = vmul.f32 %v1492_v20, %v1492_v20  ;;  %v1804_v26 = vmul.f32 %v1492_v20, %v568_v22 }
 0x334   : > { %v1508_v28 = vsel %vm489_vm0, %v1500_v25, 0.0  ;;  %v1812_v6 = vsel %vm489_vm0, %v1804_v26, 0.0 }
 0x335   : > { %1509 = vadd.xlane.f32.xlu0 %v1508_v28 }
 0x336   : > { %v1366_v16 = vpop.permute.xlu0 %1365 }
 0x337   : > { %v1388_v30 = vadd.f32 %v1366_v16, %v3546_v18  ;;  %v1475_v31 = vpop.permute.xlu1 %1474 }
 0x338   : > { %v1495_v33 = vadd.f32 %v1475_v31, %v1390_v60 }
 0x339   : > { %v1493_v36 = vadd.f32 %v1471_v27, %v1388_v30 }
 0x33a   : > { %v1503_v21 = vmul.f32 %v1495_v33, %v1495_v33  ;;  %v1807_v41 = vmul.f32 %v1495_v33, %v568_v22 }
 0x33b   : > { %v1501_v40 = vmul.f32 %v1493_v36, %v1493_v36  ;;  %v1805_v0 = vmul.f32 %v1493_v36, %v568_v22 }
 0x33c   : > { %v1517_v44 = vsel %vm489_vm0, %v1503_v21, 0.0  ;;  %v1821_v23 = vsel %vm489_vm0, %v1807_v41, 0.0 }
 0x33d   : > { %v1511_v10 = vsel %vm489_vm0, %v1501_v40, 0.0  ;;  %1518 = vadd.xlane.f32.xlu0 %v1517_v44 }
 0x33e   : > { %1512 = vadd.xlane.f32.xlu1 %v1511_v10  ;;  %v1372_v8 = vpop.permute.xlu0 %1371 }
 0x33f   : > { %v1391_v18 = vadd.f32 %v1372_v8, %v3559_v34  ;;  %v1481_v24 = vpop.permute.xlu1 %1480  ;;  %v1815_v34 = vsel %vm489_vm0, %v1805_v0, 0.0 }
 0x340   : > { %v1498_v51 = vadd.f32 %v1481_v24, %v1393_v17 }
 0x341   : > { %v1496_v50 = vadd.f32 %v1477_v7, %v1391_v18 }
 0x342   : > { %v1506_v46 = vmul.f32 %v1498_v51, %v1498_v51  ;;  %v1810_v52 = vmul.f32 %v1498_v51, %v568_v22 }
 0x343   : > { %v1808_v5 = vmul.f32 %v1496_v50, %v568_v22  ;;  %v1504_v38 = vmul.f32 %v1496_v50, %v1496_v50 }
 0x344   : > { %v1526_v53 = vsel %vm489_vm0, %v1506_v46, 0.0  ;;  %v1830_v11 = vsel %vm489_vm0, %v1810_v52, 0.0 }
 0x345   : > { %1527 = vadd.xlane.f32.xlu0 %v1526_v53  ;;  %v1520_v4 = vsel %vm489_vm0, %v1504_v38, 0.0 }
 0x346   : > { %v1378_v2 = vpop.permute.xlu0 %1377 }
 0x347   : > { %v1394_v55 = vadd.f32 %v1378_v2, %v3563_v45  ;;  %v1824_v45 = vsel %vm489_vm0, %v1808_v5, 0.0 }
 0x349   : > { %v1499_v58 = vadd.f32 %v1483_v32, %v1394_v55 }
 0x34b   : > { %v1811_v59 = vmul.f32 %v1499_v58, %v568_v22  ;;  %v1507_v56 = vmul.f32 %v1499_v58, %v1499_v58 }
 0x34d   : > { %1816 = vadd.xlane.f32.xlu0 %v1815_v34  ;;  %v1833_v9 = vsel %vm489_vm0, %v1811_v59, 0.0  ;;  %v1529_v43 = vsel %vm489_vm0, %v1507_v56, 0.0 }
 0x34e   : > { %v1473_v54 = vpop.permute.xlu0 %1472 }
 0x34f   : > { %v1494_v37 = vadd.f32 %v1473_v54, %v1389_v57 }
 0x351   : > { %v1502_v3 = vmul.f32 %v1494_v37, %v1494_v37  ;;  %v1806_v39 = vmul.f32 %v1494_v37, %v568_v22 }
 0x353   : > { %v1514_v15 = vsel %vm489_vm0, %v1502_v3, 0.0  ;;  %v1818_v48 = vsel %vm489_vm0, %v1806_v39, 0.0 }
 0x354   : > { %1515 = vadd.xlane.f32.xlu2 %v1514_v15 }
 0x355   : > { %1825 = vadd.xlane.f32.xlu0 %v1824_v45 }
 0x356   : > { %v1479_v42 = vpop.permute.xlu0 %1478 }
 0x357   : > { %v1497_v61 = vadd.f32 %v1479_v42, %v1392_v49 }
 0x359   : > { %v1505_v63 = vmul.f32 %v1497_v61, %v1497_v61  ;;  %v1809_v1 = vmul.f32 %v1497_v61, %v568_v22 }
 0x35b   : > { %v1523_v47 = vsel %vm489_vm0, %v1505_v63, 0.0  ;;  %v1827_v13 = vsel %vm489_vm0, %v1809_v1, 0.0 }
 0x35c   : > { %1521 = vadd.xlane.f32.xlu2 %v1520_v4  ;;  %1524 = vadd.xlane.f32.xlu1 %v1523_v47 }
 0x35d   : > { %1834 = vadd.xlane.f32.xlu0 %v1833_v9 }
 0x364   : > { %1530 = vadd.xlane.f32.xlu2 %v1529_v43  ;;  %1813 = vadd.xlane.f32.xlu1 %v1812_v6 }
 0x36c   : > { %1819 = vadd.xlane.f32.xlu2 %v1818_v48  ;;  %1822 = vadd.xlane.f32.xlu1 %v1821_v23 }
 0x374   : > { %1828 = vadd.xlane.f32.xlu2 %v1827_v13  ;;  %1831 = vadd.xlane.f32.xlu1 %v1830_v11 }
 0x3a8   : > { %v1510_v14 = vpop.xlane.xlu0 %1509 }
 0x3a9   : > { %v1532_v19 = vrot.slane %v1510_v14, 4 }
 0x3ab   : > { %v1533_v12 = vadd.f32 %v1532_v19, %v1510_v14 }
 0x3ad   : > { %v1534_v20 = vrot.slane %v1533_v12, 2 }
 0x3af   : > { %v1535_v22 = vadd.f32 %v1534_v20, %v1533_v12 }
 0x3b0   : > { %v1519_v25 = vpop.xlane.xlu0 %1518 }
 0x3b1   : > { %v1513_v62 = vpop.xlane.xlu1 %1512  ;;  %v1536_v26 = vrot.slane %v1535_v22, 1  ;;  %v1550_v28 = vrot.slane %v1519_v25, 4 }
 0x3b2   : > { %v1538_v27 = vrot.slane %v1513_v62, 4 }
 0x3b3   : > { %v3596_v29 = vadd.f32 %v1536_v26, %v1535_v22  ;;  %v1551_v30 = vadd.f32 %v1550_v28, %v1519_v25 }
 0x3b4   : > { %v1539_v16 = vadd.f32 %v1538_v27, %v1513_v62 }
 0x3b5   : > { %2605 = vrsqrt.f32 %v3596_v29  ;;  %v1552_v31 = vrot.slane %v1551_v30, 2  ;;  %vm1587_vm3 = vcmp.eq.f32.partialorder %v3596_v29, inf  ;;  %v1590_v48 = vand.u32 2147483648, %v3596_v29 }
 0x3b6   : > { %v1540_v60 = vrot.slane %v1539_v16, 2  ;;  %vm1589_vm4 = vcmp.eq.f32.partialorder %v3596_v29, 0.0 }
 0x3b7   : > { %v1553_v40 = vadd.f32 %v1552_v31, %v1551_v30 }
 0x3b8   : > { %v1541_v36 = vadd.f32 %v1540_v60, %v1539_v16  ;;  %v1528_v33 = vpop.xlane.xlu0 %1527 }
 0x3b9   : > { %v1568_v21 = vrot.slane %v1528_v33, 4  ;;  %v1554_v8 = vrot.slane %v1553_v40, 1 }
 0x3ba   : > { %v1542_v35 = vrot.slane %v1541_v36, 1 }
 0x3bb   : > { %v2606_v0 = vpop.eup %2605  ;;  %v1569_v44 = vadd.f32 %v1568_v21, %v1528_v33  ;;  %v3603_v24 = vadd.f32 %v1554_v8, %v1553_v40 }
 0x3bc   : > { %v3599_v41 = vadd.f32 %v1542_v35, %v1541_v36  ;;  %v1581_v10 = vmul.f32 %v2606_v0, %v3596_v29 }
 0x3bd   : > { %v1570_v18 = vrot.slane %v1569_v44, 2  ;;  %vm1623_vm7 = vcmp.eq.f32.partialorder %v3603_v24, inf  ;;  %vm1625_vm8 = vcmp.eq.f32.partialorder %v3603_v24, 0.0 }
 0x3be   : > { %2607 = vrsqrt.f32 %v3599_v41  ;;  %v1582_v7 = vmul.f32 %v2606_v0, %v1581_v10  ;;  %vm1599_vm5 = vcmp.eq.f32.partialorder %v3599_v41, inf  ;;  %v1602_v27 = vand.u32 2147483648, %v3599_v41 }
 0x3bf   : > { %v1571_v51 = vadd.f32 %v1570_v18, %v1569_v44  ;;  %2609 = vrsqrt.f32 %v3603_v24  ;;  %vm1601_vm6 = vcmp.eq.f32.partialorder %v3599_v41, 0.0 }
 0x3c0   : > { %v1583_v17 = vmul.f32 0.5, %v1582_v7  ;;  %v1817_v46 = vpop.xlane.xlu0 %1816 }
 0x3c1   : > { %v1572_v55 = vrot.slane %v1571_v51, 1  ;;  %v1842_v42 = vrot.slane %v1817_v46, 4 }
 0x3c2   : > { %v1584_v5 = vsub.f32 1.5, %v1583_v17 }
 0x3c3   : > { %v3607_v54 = vadd.f32 %v1572_v55, %v1571_v51  ;;  %v1843_v13 = vadd.f32 %v1842_v42, %v1817_v46 }
 0x3c4   : > { %v2608_v50 = vpop.eup %2607  ;;  %v1585_v58 = vmul.f32 %v2606_v0, %v1584_v5 }
 0x3c5   : > { %v1593_v52 = vmul.f32 %v2608_v50, %v3599_v41  ;;  %v3609_v3 = vpop.eup %2609  ;;  %2611 = vrsqrt.f32 %v3607_v54  ;;  %v1844_v28 = vrot.slane %v1843_v13, 2 }
 0x3c6   : > { %v1586_v39 = vmul.f32 %v1585_v58, %v3596_v29  ;;  %v1617_v63 = vmul.f32 %v3609_v3, %v3603_v24 }
 0x3c7   : > { %v1594_v53 = vmul.f32 %v2608_v50, %v1593_v52  ;;  %v1516_v2 = vpop.xlane.xlu2 %1515  ;;  %v1845_v18 = vadd.f32 %v1844_v28, %v1843_v13 }
 0x3c8   : > { %v1544_v32 = vrot.slane %v1516_v2, 4  ;;  %v1826_v49 = vpop.xlane.xlu0 %1825  ;;  %v1588_v56 = vsel %vm1587_vm3, %v3596_v29, %v1586_v39  ;;  %v1618_v14 = vmul.f32 %v3609_v3, %v1617_v63 }
 0x3c9   : > { %v1595_v59 = vmul.f32 0.5, %v1594_v53  ;;  %v1860_v47 = vrot.slane %v1826_v49, 4  ;;  %v1591_v12 = vsel %vm1589_vm4, %v1590_v48, %v1588_v56 }
 0x3ca   : > { %v1545_v57 = vadd.f32 %v1544_v32, %v1516_v2  ;;  %v3629_v29 = vmax.f32 %v1591_v12, 1e-12  ;;  %v1619_v30 = vmul.f32 0.5, %v1618_v14  ;;  %v1846_v32 = vrot.slane %v1845_v18, 1 }
 0x3cb   : > { %v1596_v34 = vsub.f32 1.5, %v1595_v59  ;;  %v1861_v20 = vadd.f32 %v1860_v47, %v1826_v49  ;;  %v3624_v22 = vpop.eup %2611 }
 0x3cc   : > { %v1546_v37 = vrot.slane %v1545_v57, 2  ;;  %v1653_v33 = vmul.f32 %v3624_v22, %v3607_v54  ;;  %v1620_v8 = vsub.f32 1.5, %v1619_v30  ;;  %vm1689_vm12 = vweird.f32 %v3629_v29 }
 0x3cd   : > { %v1597_v45 = vmul.f32 %v2608_v50, %v1596_v34  ;;  %v1862_v35 = vrot.slane %v1861_v20, 2 }
 0x3ce   : > { %v1547_v15 = vadd.f32 %v1546_v37, %v1545_v57  ;;  %v1654_v46 = vmul.f32 %v3624_v22, %v1653_v33  ;;  %v1621_v55 = vmul.f32 %v3609_v3, %v1620_v8 }
 0x3cf   : > { %v1522_v61 = vpop.xlane.xlu2 %1521  ;;  %v1525_v38 = vpop.xlane.xlu1 %1524  ;;  %v1598_v23 = vmul.f32 %v1597_v45, %v3599_v41  ;;  %v1863_v5 = vadd.f32 %v1862_v35, %v1861_v20 }
 0x3d0   : > { %v1548_v1 = vrot.slane %v1547_v15, 1  ;;  %v1556_v4 = vrot.slane %v1522_v61, 4  ;;  %v1562_v9 = vrot.slane %v1525_v38, 4  ;;  %v1835_v17 = vpop.xlane.xlu0 %1834  ;;  %v3649_v37 = vmul.f32 0.5, %v1654_v46 }
 0x3d1   : > { %v1600_v26 = vsel %vm1599_vm5, %v3599_v41, %v1598_v23  ;;  %v1878_v2 = vrot.slane %v1835_v17, 4  ;;  %v1864_v39 = vrot.slane %v1863_v5, 1  ;;  %v1622_v3 = vmul.f32 %v1621_v55, %v3603_v24 }
 0x3d2   : > { %v3617_v43 = vadd.f32 %v1548_v1, %v1547_v15  ;;  %v1557_v6 = vadd.f32 %v1556_v4, %v1522_v61  ;;  %v1563_v11 = vadd.f32 %v1562_v9, %v1525_v38  ;;  %v1603_v40 = vsel %vm1601_vm6, %v1602_v27, %v1600_v26 }
 0x3d3   : > { %v3639_v50 = vmax.f32 %v1603_v40, 1e-12  ;;  %v1879_v42 = vadd.f32 %v1878_v2, %v1835_v17  ;;  %v3655_v38 = vadd.f32 %v1846_v32, %v1845_v18  ;;  %v1626_v1 = vand.u32 2147483648, %v3603_v24 }
 0x3d4   : > { %2613 = vrsqrt.f32 %v3617_v43  ;;  %v1558_v19 = vrot.slane %v1557_v6, 2  ;;  %v1564_v25 = vrot.slane %v1563_v11, 2  ;;  %v1656_v48 = vsub.f32 1.5, %v3649_v37 }
 0x3d5   : > { %2615 = vrcp.f32 %v3629_v29  ;;  %v3665_v23 = vadd.f32 %v1864_v39, %v1863_v5  ;;  %vm1611_vm9 = vcmp.eq.f32.partialorder %v3617_v43, inf  ;;  %v1614_v12 = vand.u32 2147483648, %v3617_v43 }
 0x3d6   : > { %v1559_v62 = vadd.f32 %v1558_v19, %v1557_v6  ;;  %v1565_v31 = vadd.f32 %v1564_v25, %v1563_v11  ;;  %v1693_v6 = vand.u32 2147483647, %v3629_v29  ;;  %v1880_v19 = vrot.slane %v1879_v42, 2 }
 0x3d7   : > { %v1531_v16 = vpop.xlane.xlu2 %1530  ;;  %v1814_v61 = vpop.xlane.xlu1 %1813  ;;  %vm1613_vm10 = vcmp.eq.f32.partialorder %v3617_v43, 0.0  ;;  %v1624_v25 = vsel %vm1623_vm7, %v3603_v24, %v1622_v3  ;;  %vm1704_vm15 = vweird.f32 %v3639_v50 }
 0x3d8   : > { %v1560_v60 = vrot.slane %v1559_v62, 1  ;;  %v1574_v36 = vrot.slane %v1531_v16, 4  ;;  %v1566_v44 = vrot.slane %v1565_v31, 1  ;;  %v1836_v28 = vrot.slane %v1814_v61, 4 }
 0x3d9   : > { %vm3703_vm1 = vcmp.eq.f32.partialorder %v1693_v6, 8.507059e+37 }
 0x3da   : > { %v2614_v21 = vpop.eup %2613  ;;  %v3634_v0 = vadd.f32 %v1560_v60, %v1559_v62  ;;  %v1575_v10 = vadd.f32 %v1574_v36, %v1531_v16  ;;  %v3641_v41 = vadd.f32 %v1566_v44, %v1565_v31  ;;  %v1708_v31 = vand.u32 2147483647, %v3639_v50 }
 0x3db   : > { %v1605_v7 = vmul.f32 %v2614_v21, %v3617_v43  ;;  %v3646_v59 = vpop.eup %2615  ;;  %v1710_v36 = vand.u32 2147483648, %v3639_v50  ;;  %v1837_v46 = vadd.f32 %v1836_v28, %v1814_v61 }
 0x3dc   : > { %2617 = vrsqrt.f32 %v3634_v0  ;;  %v1576_v52 = vrot.slane %v1575_v10, 2  ;;  %v1685_v56 = vmul.f32 %v3646_v59, %v3629_v29  ;;  %vm1690_vm11 = vweird.f32 %v3646_v59 }
 0x3dd   : > { %v1606_v51 = vmul.f32 %v2614_v21, %v1605_v7  ;;  %2619 = vrsqrt.f32 %v3641_v41  ;;  %v1695_v7 = vand.u32 2147483648, %v3629_v29  ;;  %vm1635_vm13 = vcmp.eq.f32.partialorder %v3634_v0, inf  ;;  %vm3725_vm5 = vmor %vm1689_vm12, %vm1690_vm11 }
 0x3de   : > { %v1577_v58 = vadd.f32 %v1576_v52, %v1575_v10  ;;  %2621 = vrcp.f32 %v3639_v50  ;;  %v1686_v27 = vsub.f32 1.0, %v1685_v56  ;;  %v1881_v10 = vadd.f32 %v1880_v19, %v1879_v42 }
 0x3df   : > { %v1607_v53 = vmul.f32 0.5, %v1606_v51  ;;  %v1820_v30 = vpop.xlane.xlu2 %1819  ;;  %v1823_v5 = vpop.xlane.xlu1 %1822  ;;  %v1638_v24 = vand.u32 2147483648, %v3634_v0  ;;  %vm1637_vm14 = vcmp.eq.f32.partialorder %v3634_v0, 0.0  ;;  %v1838_v61 = vrot.slane %v1837_v46, 2 }
 0x3e0   : > { %v1578_v15 = vrot.slane %v1577_v58, 1  ;;  %v1848_v8 = vrot.slane %v1820_v30, 4  ;;  %v1687_v51 = vmul.f32 %v3646_v59, %v1686_v27  ;;  %v1882_v39 = vrot.slane %v1881_v10, 1 }
 0x3e1   : > { %v1608_v57 = vsub.f32 1.5, %v1607_v53  ;;  %vm1647_vm3 = vcmp.eq.f32.partialorder %v3641_v41, inf  ;;  %vm3715_vm4 = vcmp.eq.f32.partialorder %v1708_v31, 8.507059e+37  ;;  %v1839_v27 = vadd.f32 %v1838_v61, %v1837_v46 }
 0x3e2   : > { %v2618_v34 = vpop.eup %2617  ;;  %v3657_v63 = vadd.f32 %v1578_v15, %v1577_v58  ;;  %v1849_v58 = vadd.f32 %v1848_v8, %v1820_v30  ;;  %vm1649_vm6 = vcmp.eq.f32.partialorder %v3641_v41, 0.0 }
 0x3e3   : > { %v1609_v49 = vmul.f32 %v2614_v21, %v1608_v57  ;;  %v1629_v45 = vmul.f32 %v2618_v34, %v3634_v0  ;;  %v2620_v4 = vpop.eup %2619  ;;  %v1627_v21 = vsel %vm1625_vm8, %v1626_v1, %v1624_v25  ;;  %v1854_v57 = vrot.slane %v1823_v5, 4 }
 0x3e4   : > { %v1641_v13 = vmul.f32 %v2620_v4, %v3641_v41  ;;  %2623 = vrsqrt.f32 %v3657_v63  ;;  %v3669_v11 = vpop.eup %2621  ;;  %v3694_v53 = vmax.f32 %v1627_v21, 1e-12  ;;  %v1711_v1 = vor.u32 1.1754944e-38, %v1710_v36 }
 0x3e5   : > { %v1610_v47 = vmul.f32 %v1609_v49, %v3617_v43  ;;  %v1630_v9 = vmul.f32 %v2618_v34, %v1629_v45  ;;  %v1700_v60 = vmul.f32 %v3669_v11, %v3639_v50  ;;  %v1688_v45 = vadd.f32 %v3646_v59, %v1687_v51 }
 0x3e6   : > { %v1642_v20 = vmul.f32 %v2620_v4, %v1641_v13  ;;  %vm1705_vm2 = vweird.f32 %v3669_v11  ;;  %v1855_v56 = vadd.f32 %v1854_v57, %v1823_v5  ;;  %vm1671_vm7 = vcmp.eq.f32.partialorder %v3657_v63, inf }
 0x3e7   : > { %v1631_v14 = vmul.f32 0.5, %v1630_v9  ;;  %v1612_v62 = vsel %vm1611_vm9, %v3617_v43, %v1610_v47  ;;  %v1701_v52 = vsub.f32 1.0, %v1700_v60  ;;  %v1696_v47 = vor.u32 1.1754944e-38, %v1695_v7  ;;  %v1829_v28 = vpop.xlane.xlu2 %1828  ;;  %vm3760_vm11 = vmor %vm1704_vm15, %vm1705_vm2  ;;  %v1832_v8 = vpop.xlane.xlu1 %1831 }
 0x3e8   : > { %v1615_v16 = vsel %vm1613_vm10, %v1614_v12, %v1612_v62  ;;  %v1643_v33 = vmul.f32 0.5, %v1642_v20  ;;  %v1850_v9 = vrot.slane %v1849_v58, 2  ;;  %v1650_v62 = vand.u32 2147483648, %v3641_v41 }
 0x3e9   : > { %v1632_v26 = vsub.f32 1.5, %v1631_v14  ;;  %v3683_v43 = vmax.f32 %v1615_v16, 1e-12  ;;  %v3719_v14 = vadd.f32 %v1882_v39, %v1881_v10  ;;  %v1674_v16 = vand.u32 2147483648, %v3657_v63 }
 0x3ea   : > { %v2624_v40 = vpop.eup %2623  ;;  %v1644_v44 = vsub.f32 1.5, %v1643_v33  ;;  %v1851_v36 = vadd.f32 %v1850_v9, %v1849_v58  ;;  %vm1659_vm8 = vcmp.eq.f32.partialorder %v3607_v54, inf  ;;  %vm1673_vm9 = vcmp.eq.f32.partialorder %v3657_v63, 0.0 }
 0x3eb   : > { %v1633_v35 = vmul.f32 %v2618_v34, %v1632_v26  ;;  %v1665_v17 = vmul.f32 %v2624_v40, %v3657_v63  ;;  %2625 = vrcp.f32 %v3683_v43  ;;  %v1692_v26 = vsel %vm3725_vm5, %v3646_v59, %v1688_v45 }
 0x3ec   : > { %v1645_v34 = vmul.f32 %v2620_v4, %v1644_v44  ;;  %2627 = vrcp.f32 %v3694_v53  ;;  %v1856_v59 = vrot.slane %v1855_v56, 2  ;;  %v1866_v21 = vrot.slane %v1829_v28, 4 }
 0x3ed   : > { %v1634_v18 = vmul.f32 %v1633_v35, %v3634_v0  ;;  %v1666_v55 = vmul.f32 %v2624_v40, %v1665_v17  ;;  %vm1661_vm10 = vcmp.eq.f32.partialorder %v3607_v54, 0.0  ;;  %v1840_v37 = vrot.slane %v1839_v27, 1 }
 0x3ee   : > { %v1646_v3 = vmul.f32 %v1645_v34, %v3641_v41  ;;  %v1725_v50 = vand.u32 2147483648, %v3683_v43  ;;  %v1852_v17 = vrot.slane %v1851_v36, 1  ;;  %v3785_v46 = vadd.f32 %v1856_v59, %v1855_v56 }
 0x3ef   : > { %v1636_v2 = vsel %vm1635_vm13, %v3634_v0, %v1634_v18  ;;  %v1667_v15 = vmul.f32 0.5, %v1666_v55  ;;  %v1702_v0 = vmul.f32 %v3669_v11, %v1701_v52  ;;  %v1867_v5 = vadd.f32 %v1866_v21, %v1829_v28 }
 0x3f0   : > { %v1639_v32 = vsel %vm1637_vm14, %v1638_v24, %v1636_v2  ;;  %v1648_v20 = vsel %vm1647_vm3, %v3641_v41, %v1646_v3  ;;  %v1723_v2 = vand.u32 2147483647, %v3683_v43  ;;  %v1738_v55 = vand.u32 2147483647, %v3694_v53 }
 0x3f1   : > { %v3700_v49 = vmax.f32 %v1639_v32, 1e-12  ;;  %v1668_v4 = vsub.f32 1.5, %v1667_v15  ;;  %v3713_v6 = vpop.eup %2625  ;;  %v1703_v25 = vadd.f32 %v3669_v11, %v1702_v0  ;;  %v1651_v30 = vsel %vm1649_vm6, %v1650_v62, %v1648_v20 }
 0x3f2   : > { %v3739_v60 = vpop.eup %2627  ;;  %v3743_v31 = vmul.f32 %v3713_v6, %v3683_v43  ;;  %v3745_v33 = vmax.f32 %v1651_v30, 1e-12  ;;  %v1872_v32 = vrot.slane %v1832_v8, 4  ;;  %v3798_v57 = vadd.f32 %v1840_v37, %v1839_v27 }
 0x3f3   : > { %2629 = vrcp.f32 %v3700_v49  ;;  %v1669_v19 = vmul.f32 %v2624_v40, %v1668_v4  ;;  %v1657_v40 = vmul.f32 %v3624_v22, %v1656_v48  ;;  %v1707_v22 = vsel %vm3760_vm11, %v3669_v11, %v1703_v25 }
 0x3f4   : > { %2631 = vrcp.f32 %v3745_v33  ;;  %v1716_v18 = vsub.f32 1.0, %v3743_v31  ;;  %v1730_v51 = vmul.f32 %v3739_v60, %v3694_v53  ;;  %v3793_v24 = vsel %vm3715_vm4, %v1711_v1, %v1707_v22 }
 0x3f5   : > { %v1670_v29 = vmul.f32 %v1669_v19, %v3657_v63  ;;  %v1658_v52 = vmul.f32 %v1657_v40, %v3607_v54  ;;  %v1753_v58 = vand.u32 2147483647, %v3700_v49  ;;  %v3800_v34 = vor.u32 1.1754944e-38, %v1725_v50 }
 0x3f6   : > { %v1740_v39 = vand.u32 2147483648, %v3694_v53 }
 0x3f7   : > { %v1672_v35 = vsel %vm1671_vm7, %v3657_v63, %v1670_v29  ;;  %v3768_v63 = vsel %vm3703_vm1, %v1696_v47, %v1692_v26 }
 0x3f8   : > { %v1675_v7 = vsel %vm1673_vm9, %v1674_v16, %v1672_v35 }
 0x3f9   : > { %v3748_v41 = vpop.eup %2629  ;;  %v3776_v48 = vmax.f32 %v1675_v7, 1e-12 }
 0x3fa   : > { %v1745_v10 = vmul.f32 %v3748_v41, %v3700_v49 }
 0x3fb   : > { %2633 = vrcp.f32 %v3776_v48 }
 0x3fc   : > { %v1746_v11 = vsub.f32 1.0, %v1745_v10 }
 0x3fd   : > { %2742 = shalt.err (!%p2739_p8)
}
 0x3fe   : > { %s2832_s21 = smov 128   ;;  %s2833_s22 = smov 8   ;;  %v3818_v15 = vadd.f32 %v1852_v17, %v1851_v36  ;;  %v1731_v45 = vsub.f32 1.0, %v1730_v51  ;;  %v1858_v42 = vrot.slane %v3785_v46, 1  ;;  %v1662_v0 = vand.u32 2147483648, %v3607_v54  ;;  %v3822_v61 = vpop.eup %2631 }
 0x3ff   : > { %2456 = dma.vmem_to_hbm [thread:$0]  (%p2929_p11), %s3787_s8, 1024, %s2121_s19, %s2086_s10, %s2832_s21, %s2832_s21, %s2833_s22   ;;  %v1747_v3 = vmul.f32 %v3748_v41, %v1746_v11  ;;  %v1717_v1 = vmul.f32 %v3713_v6, %v1716_v18  ;;  %vm1719_vm12 = vweird.f32 %v3683_v43  ;;  %vm1735_vm13 = vweird.f32 %v3739_v60 }
 0x400   : > { %v1868_v4 = vrot.slane %v1867_v5, 2  ;;  %v1660_v47 = vsel %vm1659_vm8, %v3607_v54, %v1658_v52  ;;  %vm1749_vm14 = vweird.f32 %v3700_v49  ;;  %v1760_v9 = vmul.f32 %v3822_v61, %v3745_v33  ;;  %p344_p9 = scmp.lt.s32.totalorder %s2898_s2, 1  ;;  %s3991_s19 = scalar_lea.vmem [#allocation11], %s2282_s11 }
 0x401   : > { %v1663_v56 = vsel %vm1661_vm10, %v1662_v0, %v1660_v47  ;;  %v1873_v13 = vadd.f32 %v1872_v32, %v1832_v8  ;;  %v2634_v19 = vpop.eup %2633  ;;  %vm3836_vm15 = vcmp.eq.f32.partialorder %v1753_v58, 8.507059e+37  ;;  %v1755_v20 = vand.u32 2147483648, %v3700_v49  ;;  %s2443_s11 = sshll.u32 %s2898_s2, 8  ;;  %s2098_s4 = sshll.u32 %s3991_s19, 4  ;;  %s2099_s4 = int_to_ptr.vmem [resolvable:$true] %s2098_s4 }
 0x402   : > { %vm1720_vm1 = vweird.f32 %v3713_v6  ;;  %vm1734_vm2 = vweird.f32 %v3694_v53  ;;  %v3843_v62 = vmax.f32 %v1663_v56, 1e-12  ;;  %vm1750_vm3 = vweird.f32 %v3748_v41  ;;  %s345_s25 = scalar_select %p344_p9, %s2898_s2, 1 }
 0x403   : > { %v1790_v25 = vmul.f32 %v2634_v19, %v3776_v48  ;;  %v1732_v54 = vmul.f32 %v3739_v60, %v1731_v45  ;;  %v1761_v26 = vsub.f32 1.0, %v1760_v9  ;;  %v1748_v27 = vadd.f32 %v3748_v41, %v1747_v3  ;;  %vm3865_vm7 = vmor %vm1749_vm14, %vm1750_vm3  ;;  %s2097_s1 = scalar_lea.hbm %s4150_s5, %s2443_s11 }
 0x404   : > { %v1718_v28 = vadd.f32 %v3713_v6, %v1717_v1  ;;  %vm3850_vm4 = vcmp.eq.f32.partialorder %v1723_v2, 8.507059e+37  ;;  %v1869_v16 = vadd.f32 %v1868_v4, %v1867_v5  ;;  %2635 = vrcp.f32 %v3843_v62  ;;  %vm3892_vm14 = vmor %vm1719_vm12, %vm1720_vm1  ;;  %s2287_s8 = sshll.u32 %s345_s25, 3  ;;  %s2100_s13 = sshll.u32 %s2097_s1, 4  ;;  %s2101_s13 = int_to_ptr.hbm [resolvable:$true] %s2100_s13 }
 0x405   : > { %v1791_v30 = vsub.f32 1.0, %v1790_v25  ;;  %v1762_v31 = vmul.f32 %v3822_v61, %v1761_v26  ;;  %vm1765_vm5 = vweird.f32 %v3822_v61  ;;  %v1874_v36 = vrot.slane %v1873_v13, 2  ;;  %vm3909_vm12 = vmor %vm1734_vm2, %vm1735_vm13  ;;  %s3942_s12 = scalar_lea.vmem %s4151_s6, %s2287_s8  ;;  %s2757_s16 = sshra.s32 %s2101_s13, 4  ;;  %s2758_s16 = int_to_ptr.hbm [resolvable:$true] %s2757_s16 }
 0x406   : > { %v1798_v59 = vand.u32 2147483647, %v3776_v48  ;;  %v1800_v35 = vand.u32 2147483648, %v3776_v48  ;;  %vm1764_vm6 = vweird.f32 %v3745_v33  ;;  %v1770_v21 = vand.u32 2147483648, %v3745_v33  ;;  %s2759_s23 = scalar_lea.hbm %s2758_s16, 256  ;;  %s2763_s25 = scalar_lea.hbm %s4150_s5, 512 }
 0x407   : > { %v1792_v44 = vmul.f32 %v2634_v19, %v1791_v30  ;;  %vm1795_vm8 = vweird.f32 %v2634_v19  ;;  %vm3871_vm9 = vcmp.eq.f32.partialorder %v1738_v55, 8.507059e+37  ;;  %v1763_v37 = vadd.f32 %v3822_v61, %v1762_v31  ;;  %vm3884_vm11 = vmor %vm1764_vm6, %vm1765_vm5  ;;  %p2760_p10 = scmp.ne.s32.totalorder %s2758_s16, %s2759_s23  ;;  %p2764_p3 = scmp.lt.s32.totalorder %s2758_s16, %s4150_s5 }
 0x408   : > { %v1768_v7 = vand.u32 2147483647, %v3745_v33  ;;  %v1752_v49 = vsel %vm3865_vm7, %v3748_v41, %v1748_v27  ;;  %v1756_v22 = vor.u32 1.1754944e-38, %v1755_v20  ;;  %vm1794_vm10 = vweird.f32 %v3776_v48  ;;  %p2765_p4 = scmp.lt.s32.totalorder %s2763_s25, %s2759_s23 }
 0x409   : > { %v1733_v50 = vadd.f32 %v3739_v60, %v1732_v54  ;;  %v1793_v41 = vadd.f32 %v2634_v19, %v1792_v44  ;;  %v1767_v48 = vsel %vm3884_vm11, %v3822_v61, %v1763_v37  ;;  %v1870_v18 = vrot.slane %v1869_v16, 1  ;;  %vm1796_vm3 = vmor %vm1794_vm10, %vm1795_vm8  ;;  %p2761_p1 = pnand %p2760_p10, %p2929_p11 }
 0x40a   : > { %v1875_v17 = vadd.f32 %v1874_v36, %v1873_v13  ;;  %v2636_v51 = vpop.eup %2635  ;;  %v1722_v11 = vsel %vm3892_vm14, %v3713_v6, %v1718_v28  ;;  %vm1799_vm5 = vcmp.eq.f32.partialorder %v1798_v59, 8.507059e+37  ;;  %v1801_v43 = vor.u32 1.1754944e-38, %v1800_v35  ;;  %p2766_p6 = por %p2765_p4, %p2764_p3 }
 0x40b   : > { %v1771_v5 = vor.u32 1.1754944e-38, %v1770_v21  ;;  %v1757_v52 = vsel %vm3836_vm15, %v1756_v22, %v1752_v49  ;;  %v1797_v2 = vsel %vm1796_vm3, %v2634_v19, %v1793_v41  ;;  %vm1769_vm1 = vcmp.eq.f32.partialorder %v1768_v7, 8.507059e+37  ;;  %p2762_p2 = pneg %p2761_p1 }
 0x40c   : > { %v1775_v6 = vmul.f32 %v2636_v51, %v3843_v62  ;;  %v1802_v32 = vsel %vm1799_vm5, %v1801_v43, %v1797_v2  ;;  %v1737_v58 = vsel %vm3909_vm12, %v3739_v60, %v1733_v50  ;;  %v1859_v45 = vadd.f32 %v1858_v42, %v3785_v46 }
 0x40d   : > { %v1772_v0 = vsel %vm1769_vm1, %v1771_v5, %v1767_v48  ;;  %v1727_v61 = vsel %vm3850_vm4, %v3800_v34, %v1722_v11  ;;  %v1871_v3 = vadd.f32 %v1870_v18, %v1869_v16  ;;  %v1876_v4 = vrot.slane %v1875_v17, 1  ;;  %p2767_p13 = pnand %p2766_p6, %p2762_p2 }
 0x40e   : > { %v1776_v1 = vsub.f32 1.0, %v1775_v6  ;;  %v1888_v47 = vmul.f32 %v3665_v23, %v1757_v52  ;;  %v1741_v9 = vor.u32 1.1754944e-38, %v1740_v39  ;;  %v1783_v56 = vand.u32 2147483647, %v3843_v62 }
 0x40f   : > { %v1785_v60 = vand.u32 2147483648, %v3843_v62  ;;  %v1891_v13 = vmul.f32 %v3719_v14, %v1802_v32  ;;  %v1889_v46 = vmul.f32 %v1871_v3, %v1772_v0  ;;  %vm1780_vm13 = vweird.f32 %v2636_v51 }
 0x410   : > { %v1777_v42 = vmul.f32 %v2636_v51, %v1776_v1  ;;  %v1885_v34 = vmul.f32 %v3655_v38, %v3793_v24  ;;  %v1884_v19 = vmul.f32 %v3798_v57, %v3768_v63  ;;  %v1886_v23 = vmul.f32 %v3818_v15, %v1727_v61 }
 0x411   : > { %v1742_v53 = vsel %vm3871_vm9, %v1741_v9, %v1737_v58  ;;  %vm1779_vm15 = vweird.f32 %v3843_v62  ;;  %v1877_v20 = vadd.f32 %v1876_v4, %v1875_v17  ;;  %v1896_v14 = vmul.f32 32.0, %v1888_v47 }
 0x412   : > { %v1887_v39 = vmul.f32 %v1859_v45, %v1742_v53  ;;  %v1778_v12 = vadd.f32 %v2636_v51, %v1777_v42  ;;  %vm1781_vm2 = vmor %vm1779_vm15, %vm1780_vm13  ;;  %v1786_v25 = vor.u32 1.1754944e-38, %v1785_v60  ;;  %v1899_v54 = vmul.f32 32.0, %v1891_v13 }
 0x413   : > { %v1897_v26 = vmul.f32 32.0, %v1889_v46  ;;  %vm1784_vm4 = vcmp.eq.f32.partialorder %v1783_v56, 8.507059e+37  ;;  %v1893_v38 = vmul.f32 32.0, %v1885_v34  ;;  %v1892_v63 = vmul.f32 32.0, %v1884_v19 }
 0x414   : > { %v1782_v27 = vsel %vm1781_vm2, %v2636_v51, %v1778_v12  ;;  %v1894_v57 = vmul.f32 32.0, %v1886_v23  ;;  %v1895_v15 = vmul.f32 32.0, %v1887_v39  ;;  %vm1960_vm10 = vcmask 0  }
 0x415   : > { %v1787_v24 = vsel %vm1784_vm4, %v1786_v25, %v1782_v27  ;;  %v1900_v29 = vmax.f32 %v1892_v63, %v1896_v14  ;;  %v1901_v30 = vmax.f32 %v1893_v38, %v1897_v26 }
 0x416   : > { %v1890_v28 = vmul.f32 %v1877_v20, %v1787_v24  ;;  %v1903_v16 = vmax.f32 %v1895_v15, %v1899_v54 }
 0x417   : > { %v1904_v62 = vmax.f32 %v1900_v29, %v1901_v30  ;;  %v1980_v29 = vld [vmem:[%s2983_s17 + $0x60] sm:$0xff] }
 0x418   : > { %v1898_v31 = vmul.f32 32.0, %v1890_v28 }
 0x41a   : > { %v1902_v36 = vmax.f32 %v1894_v57, %v1898_v31 }
 0x41c   : > { %v1905_v59 = vmax.f32 %v1902_v36, %v1903_v16 }
 0x41e   : > { %v1906_v35 = vmax.f32 %v1904_v62, %v1905_v59  ;;  %v1982_v59 = vld [vmem:[%s2983_s17 + $0xa0] sm:$0xff] }
 0x420   : > { %v1907_v21 = vsub.f32 %v1892_v63, %v1906_v35  ;;  %v1908_v40 = vsub.f32 %v1893_v38, %v1906_v35  ;;  %v1909_v44 = vsub.f32 %v1894_v57, %v1906_v35  ;;  %v1910_v10 = vsub.f32 %v1895_v15, %v1906_v35  ;;  %v1978_v38 = vld [vmem:[%s2983_s17 + $0x20] sm:$0xff] }
 0x421   : > { %v1911_v49 = vsub.f32 %v1896_v14, %v1906_v35  ;;  %v1912_v50 = vsub.f32 %v1897_v26, %v1906_v35  ;;  %v1913_v33 = vsub.f32 %v1898_v31, %v1906_v35  ;;  %v1914_v48 = vsub.f32 %v1899_v54, %v1906_v35  ;;  %v1977_v54 = vld [vmem:[%s2983_s17] sm:$0xff] }
 0x422   : > { %v1915_v37 = vmul.f32 1.442695, %v1907_v21  ;;  %v1917_v7 = vmul.f32 1.442695, %v1908_v40  ;;  %v1919_v22 = vmul.f32 1.442695, %v1909_v44 }
 0x423   : > { %v1921_v8 = vmul.f32 1.442695, %v1910_v10  ;;  %v1923_v41 = vmul.f32 1.442695, %v1911_v49  ;;  %v1925_v18 = vmul.f32 1.442695, %v1912_v50 }
 0x424   : > { %2637 = vpow2.f32 %v1915_v37  ;;  %v1927_v11 = vmul.f32 1.442695, %v1913_v33  ;;  %v1929_v52 = vmul.f32 1.442695, %v1914_v48  ;;  %v1979_v57 = vld [vmem:[%s2983_s17 + $0x40] sm:$0xff]  ;;  %v2386_v49 = vld [vmem:[%s2983_s17 + $0x8] sm:$0xff] }
 0x425   : > { %2639 = vpow2.f32 %v1917_v7  ;;  %v1981_v31 = vld [vmem:[%s2983_s17 + $0x80] sm:$0xff]  ;;  %v2387_v50 = vld [vmem:[%s2983_s17 + $0x28] sm:$0xff] }
 0x426   : > { %2641 = vpow2.f32 %v1919_v22  ;;  %v1983_v40 = vld [vmem:[%s2983_s17 + $0xc0] sm:$0xff]  ;;  %v2388_v33 = vld [vmem:[%s2983_s17 + $0x48] sm:$0xff] }
 0x427   : > { %2643 = vpow2.f32 %v1921_v8  ;;  %v1984_v37 = vld [vmem:[%s2983_s17 + $0xe0] sm:$0xff]  ;;  %v2389_v48 = vld [vmem:[%s2983_s17 + $0x68] sm:$0xff] }
 0x428   : > { %2645 = vpow2.f32 %v1923_v41 }
 0x429   : > { %2647 = vpow2.f32 %v1925_v18 }
 0x42a   : > { %v2638_v17 = vpop.eup %2637  ;;  %2649 = vpow2.f32 %v1927_v11  ;;  %v2391_v11 = vld [vmem:[%s2983_s17 + $0xa8] sm:$0xff] }
 0x42b   : > { %v2640_v51 = vpop.eup %2639  ;;  %2651 = vpow2.f32 %v1929_v52 }
 0x42c   : > { %v1931_v43 = vadd.f32 %v2640_v51, %v2638_v17  ;;  %v2642_v5 = vpop.eup %2641 }
 0x42d   : > { %v2644_v55 = vpop.eup %2643 }
 0x42e   : > { %v1932_v2 = vadd.f32 %v2642_v5, %v1931_v43  ;;  %v2646_v32 = vpop.eup %2645 }
 0x42f   : > { %v2648_v45 = vpop.eup %2647 }
 0x430   : > { %v1933_v6 = vadd.f32 %v2644_v55, %v1932_v2  ;;  %v2650_v61 = vpop.eup %2649  ;;  %v2393_v2 = vld [vmem:[%s2983_s17 + $0xe8] sm:$0xff] }
 0x431   : > { %v2652_v1 = vpop.eup %2651 }
 0x432   : > { %v1934_v58 = vadd.f32 %v2646_v32, %v1933_v6  ;;  %v2402_v6 = vld [vmem:[%s2983_s17 + $0x10] sm:$0xff] }
 0x434   : > { %v1935_v0 = vadd.f32 %v2648_v45, %v1934_v58  ;;  %v2403_v58 = vld [vmem:[%s2983_s17 + $0x30] sm:$0xff] }
 0x436   : > { %v1936_v3 = vadd.f32 %v2650_v61, %v1935_v0  ;;  %v2404_v0 = vld [vmem:[%s2983_s17 + $0x50] sm:$0xff] }
 0x438   : > { %v1937_v4 = vadd.f32 %v2652_v1, %v1936_v3  ;;  %v2405_v3 = vld [vmem:[%s2983_s17 + $0x70] sm:$0xff] }
 0x43a   : > { %2653 = vrcp.f32 %v1937_v4  ;;  %v1949_v60 = vand.u32 2147483648, %v1937_v4  ;;  %v1947_v46 = vand.u32 2147483647, %v1937_v4  ;;  %vm1943_vm7 = vweird.f32 %v1937_v4 }
 0x43c   : > { %v1950_v34 = vor.u32 1.1754944e-38, %v1949_v60  ;;  %vm1948_vm9 = vcmp.eq.f32.partialorder %v1947_v46, 8.507059e+37  ;;  %v2408_v60 = vld [vmem:[%s2983_s17 + $0xd0] sm:$0xff] }
 0x43d   : > { %v2409_v46 = vld [vmem:[%s2983_s17 + $0xf0] sm:$0xff] }
 0x440   : > { %v2654_v47 = vpop.eup %2653 }
 0x441   : > { %v1939_v9 = vmul.f32 %v2654_v47, %v1937_v4  ;;  %vm1944_vm6 = vweird.f32 %v2654_v47  ;;  %v2406_v4 = vld [vmem:[%s2983_s17 + $0x90] sm:$0xff] }
 0x442   : > { %vm1945_vm8 = vmor %vm1943_vm7, %vm1944_vm6 }
 0x443   : > { %v1940_v56 = vsub.f32 1.0, %v1939_v9  ;;  %v2407_v9 = vld [vmem:[%s2983_s17 + $0xb0] sm:$0xff] }
 0x445   : > { %v1941_v13 = vmul.f32 %v2654_v47, %v1940_v56 }
 0x447   : > { %v1942_v42 = vadd.f32 %v2654_v47, %v1941_v13 }
 0x449   : > { %v1946_v19 = vsel %vm1945_vm8, %v2654_v47, %v1942_v42 }
 0x44a   : > { %v1951_v23 = vsel %vm1948_vm9, %v1950_v34, %v1946_v19  ;;  %v2418_v34 = vld [vmem:[%s2983_s17 + $0x18] sm:$0xff] }
 0x44b   : > { %v1952_v53 = vmul.f32 %v2638_v17, %v1951_v23  ;;  %v1953_v39 = vmul.f32 %v2640_v51, %v1951_v23  ;;  %v1954_v12 = vmul.f32 %v2642_v5, %v1951_v23  ;;  %v1955_v20 = vmul.f32 %v2644_v55, %v1951_v23  ;;  %v2390_v17 = vld [vmem:[%s2983_s17 + $0x88] sm:$0xff] }
 0x44c   : > { %v1956_v14 = vmul.f32 %v2646_v32, %v1951_v23  ;;  %v1957_v26 = vmul.f32 %v2648_v45, %v1951_v23  ;;  %v1958_v24 = vmul.f32 %v2650_v61, %v1951_v23  ;;  %v1959_v15 = vmul.f32 %v2652_v1, %v1951_v23  ;;  %v2392_v5 = vld [vmem:[%s2983_s17 + $0xc8] sm:$0xff]  ;;  %v2419_v23 = vld [vmem:[%s2983_s17 + $0x38] sm:$0xff] }
 0x44d   : > { %1961 = vst.msk [vmem:[%s3942_s12] sm:$0x1] %vm1960_vm10, %v1952_v53  ;;  %v3946_v25 = vadd.f32 1.0, %v1952_v53  ;;  %v3951_v27 = vadd.f32 1.0, %v1953_v39  ;;  %v3956_v63 = vadd.f32 1.0, %v1954_v12  ;;  %v3961_v28 = vadd.f32 1.0, %v1955_v20 }
 0x44e   : > { %1962 = vst.msk [vmem:[%s3942_s12 + $0x1] sm:$0x1] %vm1960_vm10, %v1953_v39  ;;  %v3966_v16 = vadd.f32 1.0, %v1956_v14  ;;  %v3972_v36 = vadd.f32 1.0, %v1957_v26  ;;  %v3978_v35 = vadd.f32 1.0, %v1958_v24  ;;  %v3984_v44 = vadd.f32 1.0, %v1959_v15 }
 0x44f   : > { %1963 = vst.msk [vmem:[%s3942_s12 + $0x2] sm:$0x1] %vm1960_vm10, %v1954_v12  ;;  %v1985_v30 = vmul.f32 %v1977_v54, %v3946_v25  ;;  %v1986_v62 = vmul.f32 %v1978_v38, %v3951_v27  ;;  %v1987_v21 = vmul.f32 %v1979_v57, %v3956_v63  ;;  %v1988_v10 = vmul.f32 %v1980_v29, %v3961_v28  ;;  %v2420_v39 = vld [vmem:[%s2983_s17 + $0x58] sm:$0xff] }
 0x450   : > { %1964 = vst.msk [vmem:[%s3942_s12 + $0x3] sm:$0x1] %vm1960_vm10, %v1955_v20  ;;  %v1989_v7 = vmul.f32 %v1981_v31, %v3966_v16  ;;  %v1990_v22 = vmul.f32 %v1982_v59, %v3972_v36  ;;  %v1991_v8 = vmul.f32 %v1983_v40, %v3978_v35  ;;  %v1992_v41 = vmul.f32 %v1984_v37, %v3984_v44  ;;  %v2421_v20 = vld [vmem:[%s2983_s17 + $0x78] sm:$0xff] }
 0x451   : > { %1965 = vst.msk [vmem:[%s3942_s12 + $0x4] sm:$0x1] %vm1960_vm10, %v1956_v14  ;;  %v2009_v18 = vmul.f32 %v2386_v49, %v3946_v25  ;;  %v2010_v51 = vmul.f32 %v2387_v50, %v3951_v27  ;;  %v2011_v43 = vmul.f32 %v2388_v33, %v3956_v63  ;;  %v2012_v52 = vmul.f32 %v2389_v48, %v3961_v28  ;;  %v2422_v54 = vld [vmem:[%s2983_s17 + $0x98] sm:$0xff] }
 0x452   : > { %1966 = vst.msk [vmem:[%s3942_s12 + $0x5] sm:$0x1] %vm1960_vm10, %v1957_v26  ;;  %v2013_v55 = vmul.f32 %v2390_v17, %v3966_v16  ;;  %v2014_v32 = vmul.f32 %v2391_v11, %v3972_v36  ;;  %v2015_v45 = vmul.f32 %v2392_v5, %v3978_v35  ;;  %v2016_v61 = vmul.f32 %v2393_v2, %v3984_v44  ;;  %v2423_v38 = vld [vmem:[%s2983_s17 + $0xb8] sm:$0xff] }
 0x453   : > { %1967 = vst.msk [vmem:[%s3942_s12 + $0x6] sm:$0x1] %vm1960_vm10, %v1958_v24  ;;  %v2034_v1 = vmul.f32 %v2402_v6, %v3946_v25  ;;  %v2035_v47 = vmul.f32 %v2403_v58, %v3951_v27  ;;  %v2036_v56 = vmul.f32 %v2404_v0, %v3956_v63  ;;  %v2037_v13 = vmul.f32 %v2405_v3, %v3961_v28  ;;  %v2424_v57 = vld [vmem:[%s2983_s17 + $0xd8] sm:$0xff] }
 0x454   : > { %1968 = vst.msk [vmem:[%s3942_s12 + $0x7] sm:$0x1] %vm1960_vm10, %v1959_v15  ;;  %v2038_v42 = vmul.f32 %v2406_v4, %v3966_v16  ;;  %v2039_v19 = vmul.f32 %v2407_v9, %v3972_v36  ;;  %v2040_v53 = vmul.f32 %v2408_v60, %v3978_v35  ;;  %v2041_v12 = vmul.f32 %v2409_v46, %v3984_v44  ;;  %v2425_v15 = vld [vmem:[%s2983_s17 + $0xf8] sm:$0xff]  ;;  %s2077_s17 = scalar_lea.sflag [#allocation6], %s2977_s9 }
 0x455   : > { %1993 = vst.msk [vmem:[%s3991_s19] sm:$0xff] %vm489_vm0, %v1985_v30  ;;  %v2059_v14 = vmul.f32 %v2418_v34, %v3946_v25  ;;  %v2060_v26 = vmul.f32 %v2419_v23, %v3951_v27  ;;  %v2061_v24 = vmul.f32 %v2420_v39, %v3956_v63  ;;  %v2062_v25 = vmul.f32 %v2421_v20, %v3961_v28 }
 0x456   : > { %1994 = vst.msk [vmem:[%s3991_s19 + $0x20] sm:$0xff] %vm489_vm0, %v1986_v62  ;;  %v2063_v27 = vmul.f32 %v2422_v54, %v3966_v16  ;;  %v2064_v63 = vmul.f32 %v2423_v38, %v3972_v36  ;;  %v2065_v29 = vmul.f32 %v2424_v57, %v3978_v35  ;;  %v2066_v28 = vmul.f32 %v2425_v15, %v3984_v44 }
 0x457   : > { %1995 = vst.msk [vmem:[%s3991_s19 + $0x40] sm:$0xff] %vm489_vm0, %v1987_v21 }
 0x458   : > { %1996 = vst.msk [vmem:[%s3991_s19 + $0x60] sm:$0xff] %vm489_vm0, %v1988_v10 }
 0x459   : > { %1997 = vst.msk [vmem:[%s3991_s19 + $0x80] sm:$0xff] %vm489_vm0, %v1989_v7 }
 0x45a   : > { %1998 = vst.msk [vmem:[%s3991_s19 + $0xa0] sm:$0xff] %vm489_vm0, %v1990_v22 }
 0x45b   : > { %1999 = vst.msk [vmem:[%s3991_s19 + $0xc0] sm:$0xff] %vm489_vm0, %v1991_v8 }
 0x45c   : > { %2000 = vst.msk [vmem:[%s3991_s19 + $0xe0] sm:$0xff] %vm489_vm0, %v1992_v41 }
 0x45d   : > { %2394 = vst.msk [vmem:[%s3991_s19 + $0x8] sm:$0xff] %vm489_vm0, %v2009_v18 }
 0x45e   : > { %2395 = vst.msk [vmem:[%s3991_s19 + $0x28] sm:$0xff] %vm489_vm0, %v2010_v51 }
 0x45f   : > { %2396 = vst.msk [vmem:[%s3991_s19 + $0x48] sm:$0xff] %vm489_vm0, %v2011_v43 }
 0x460   : > { %2397 = vst.msk [vmem:[%s3991_s19 + $0x68] sm:$0xff] %vm489_vm0, %v2012_v52 }
 0x461   : > { %2398 = vst.msk [vmem:[%s3991_s19 + $0x88] sm:$0xff] %vm489_vm0, %v2013_v55 }
 0x462   : > { %2399 = vst.msk [vmem:[%s3991_s19 + $0xa8] sm:$0xff] %vm489_vm0, %v2014_v32 }
 0x463   : > { %2400 = vst.msk [vmem:[%s3991_s19 + $0xc8] sm:$0xff] %vm489_vm0, %v2015_v45 }
 0x464   : > { %2401 = vst.msk [vmem:[%s3991_s19 + $0xe8] sm:$0xff] %vm489_vm0, %v2016_v61 }
 0x465   : > { %2410 = vst.msk [vmem:[%s3991_s19 + $0x10] sm:$0xff] %vm489_vm0, %v2034_v1 }
 0x466   : > { %2411 = vst.msk [vmem:[%s3991_s19 + $0x30] sm:$0xff] %vm489_vm0, %v2035_v47 }
 0x467   : > { %2412 = vst.msk [vmem:[%s3991_s19 + $0x50] sm:$0xff] %vm489_vm0, %v2036_v56 }
 0x468   : > { %2413 = vst.msk [vmem:[%s3991_s19 + $0x70] sm:$0xff] %vm489_vm0, %v2037_v13 }
 0x469   : > { %2414 = vst.msk [vmem:[%s3991_s19 + $0x90] sm:$0xff] %vm489_vm0, %v2038_v42 }
 0x46a   : > { %2415 = vst.msk [vmem:[%s3991_s19 + $0xb0] sm:$0xff] %vm489_vm0, %v2039_v19 }
 0x46b   : > { %2416 = vst.msk [vmem:[%s3991_s19 + $0xd0] sm:$0xff] %vm489_vm0, %v2040_v53 }
 0x46c   : > { %2417 = vst.msk [vmem:[%s3991_s19 + $0xf0] sm:$0xff] %vm489_vm0, %v2041_v12 }
 0x46d   : > { %2426 = vst.msk [vmem:[%s3991_s19 + $0x18] sm:$0xff] %vm489_vm0, %v2059_v14 }
 0x46e   : > { %2427 = vst.msk [vmem:[%s3991_s19 + $0x38] sm:$0xff] %vm489_vm0, %v2060_v26 }
 0x46f   : > { %2428 = vst.msk [vmem:[%s3991_s19 + $0x58] sm:$0xff] %vm489_vm0, %v2061_v24 }
 0x470   : > { %2429 = vst.msk [vmem:[%s3991_s19 + $0x78] sm:$0xff] %vm489_vm0, %v2062_v25 }
 0x471   : > { %2430 = vst.msk [vmem:[%s3991_s19 + $0x98] sm:$0xff] %vm489_vm0, %v2063_v27 }
 0x472   : > { %2431 = vst.msk [vmem:[%s3991_s19 + $0xb8] sm:$0xff] %vm489_vm0, %v2064_v63 }
 0x473   : > { %2432 = vst.msk [vmem:[%s3991_s19 + $0xd8] sm:$0xff] %vm489_vm0, %v2065_v29 }
 0x474   : > { %2433 = vst.msk [vmem:[%s3991_s19 + $0xf8] sm:$0xff] %vm489_vm0, %v2066_v28 }
 0x475   : > { %2770 = shalt.err (!%p2767_p13)
}
 0x476   : > { %2455 = dma.vmem_to_hbm [thread:$0]  (%p2929_p11), %s2099_s4, 4096, %s2101_s13, %s2077_s17, %s2832_s21, %s2832_s21, %s2833_s22  }
 0x477 PF: > { %s2135_s9 = sand.u32 1, %s2809_s26   ;;  %p4189_p0 = scmp.ge.s32.totalorder %s2821_s29, 2 }
 0x478   : > { %s2136_s30 = scalar_lea.sflag [#allocation6], %s2135_s9 }
 0x479   : > { %p2471_p7 = pnand %p4189_p0, %p2933_p12 }
 0x47b   : > { %p2472_p5 = pneg %p2471_p7 }
 0x47d   : > { %2800 = dma.done.wait (%p2472_p5), %s2136_s30, 4096  }
 0x47e   : > { %2802 = vsyncadd (%p2472_p5), %s2136_s30, 4294963200  ;;  %s2153_s12 = scalar_lea.sflag [#allocation13], %s2135_s9 }
 0x47f   : > { %2804 = dma.done.wait (%p2472_p5), %s2153_s12, 1024  }
 0x480   : > { %2806 = vsyncadd (%p2472_p5), %s2153_s12, 4294966272  ;;  %s4190_s29 = sld [smem:[#allocation19_spill]]  ;;  %s4192_s26 = smov %s2813_s27 }
 0x481   : > { %s4191_s14 = sld [smem:[#allocation20_spill]]  ;;  %s4193_s27 = smov %s2817_s28 }
 0x486   : > { %p27_p11 = scmp.ge.s32.totalorder %s4190_s29, 4  }
 0x487   : > { %s4194_s28 = smov %s4191_s14 }
 0x488   :  { %29 = sbr.rel (!%p27_p11) target bundleno = 13 (0xd), region = 137 }
 0x48d   :  { %2159 = vsyncpa [#allocation5], 1 }
 0x48e   :  { %2161 = vsyncpa [#allocation5 + $0x1], 1 }
 0x48f   :  { %2162 = vsyncpa [#allocation6], 1 }
 0x490   :  { %2164 = vsyncpa [#allocation6 + $0x1], 1 }
 0x491   :  { %2165 = vsyncpa [#allocation13], 1 }
 0x492   :  { %2167 = vsyncpa [#allocation13 + $0x1], 1 }
 0x493   :  { %2168 = vsyncpa [#allocation7], 1 }
 0x494   :  { %2170 = vsyncpa [#allocation7 + $0x1], 1 }
 0x495   :  { %2171 = vsyncpa [#allocation10], 1 }

</bundles_post_ra>
